<compile_context>
chip_gen: v5e
topology: v5e:2x2
jax: 0.10.0
libtpu: 0.0.40
codegen_flags: <defaults>
</compile_context>

<pallas_src>
import jax
import jax.numpy as jnp
from jax.experimental import pallas as pl
from jax.experimental.pallas import tpu as pltpu

B = 16     # batch of points on the manifold
BT = 8     # batch tile per grid step (one sublane group)
D = 32     # ambient dimension of the sphere manifold
L = 4      # number of vector fields (residual steps)
EPS = 1e-12


def rresnet_kernel(x_ref, w_ref, b_ref, o_ref):
    """Full RResNet forward for one batch tile: L residual steps, unrolled."""
    x = x_ref[...].astype(jnp.float32)          # (BT, D), rows on the unit sphere
    n_layers = w_ref.shape[0]

    for l in range(n_layers):                   # statically unrolled
        w = w_ref[l]                            # (D, D)
        b = b_ref[l]                            # (1, D)

        # vector field: M -> ambient (MXU matmul), then project onto T_x M
        v = jnp.tanh(jnp.dot(x, w, preferred_element_type=jnp.float32) + b)
        v = v - jnp.sum(v * x, axis=-1, keepdims=True) * x

        # sphere exponential map  exp_x(v) = cos(|v|) x + sin(|v|) v/|v|
        sq = jnp.sum(v * v, axis=-1, keepdims=True)       # (BT, 1)
        inv = jax.lax.rsqrt(sq + EPS)                      # 1/|v|   (single EUP op)
        nrm = sq * inv                                     # |v|
        c = jnp.cos(nrm)                                   # (BT, 1) narrow EUP
        s = jnp.sin(nrm)                                   # (BT, 1) narrow EUP
        y = c * x + (s * inv) * v

        # projx: retract back onto the unit sphere
        x = y * jax.lax.rsqrt(jnp.sum(y * y, axis=-1, keepdims=True) + EPS)

    o_ref[...] = x.astype(o_ref.dtype)


def rresnet_forward(x, w, b):
    """x: (B, D) unit rows; w: (L, D, D); b: (L, 1, D) -> (B, D)."""
    n_layers = w.shape[0]
    return pl.pallas_call(
        rresnet_kernel,
        out_shape=jax.ShapeDtypeStruct((B, D), jnp.float32),
        grid=(B // BT,),                                        # parallel batch tiles
        in_specs=[
            pl.BlockSpec((BT, D), lambda i: (i, 0)),            # x tile
            pl.BlockSpec((n_layers, D, D), lambda i: (0, 0, 0)),  # all W, one DMA
            pl.BlockSpec((n_layers, 1, D), lambda i: (0, 0, 0)),  # all b, one DMA
        ],
        out_specs=pl.BlockSpec((BT, D), lambda i: (i, 0)),
        compiler_params=pltpu.CompilerParams(
            dimension_semantics=("parallel",)),                 # shards across TCs on v7x
    )(x, w, b)


def rresnet_reference(x, w, b):
    """Pure-JAX mirror of the kernel math (for a correctness check)."""
    for l in range(w.shape[0]):
        v = jnp.tanh(x @ w[l] + b[l])
        v = v - jnp.sum(v * x, axis=-1, keepdims=True) * x
        sq = jnp.sum(v * v, axis=-1, keepdims=True)
        inv = jax.lax.rsqrt(sq + EPS)
        nrm = sq * inv
        y = jnp.cos(nrm) * x + (jnp.sin(nrm) * inv) * v
        x = y * jax.lax.rsqrt(jnp.sum(y * y, axis=-1, keepdims=True) + EPS)
    return x


if __name__ == "__main__":
    key = jax.random.PRNGKey(0)
    kx, kw, kb = jax.random.split(key, 3)

    # input points: random, projected onto the sphere (manifold.projx of init)
    x = jax.random.normal(kx, (B, D), jnp.float32)
    x = x / jnp.linalg.norm(x, axis=-1, keepdims=True)

    # deterministic synthetic parameters for the L vector fields
    w = 0.1 * jax.random.normal(kw, (L, D, D), jnp.float32)
    b = 0.1 * jax.random.normal(kb, (L, 1, D), jnp.float32)

    out = jax.block_until_ready(rresnet_forward(x, w, b))

    ref = rresnet_reference(x, w, b)
    assert out.shape == (B, D)
    assert bool(jnp.allclose(out, ref, atol=1e-4, rtol=1e-4))
    # outputs must lie on the sphere (|x| == 1) after projx
    assert bool(jnp.allclose(jnp.linalg.norm(out, axis=-1), 1.0, atol=1e-4))

    print("KERNEL_OK")
</pallas_src>

<mosaic_0001>
module attributes {stable_mosaic.version = 11 : i64} {
  func.func @rresnet_kernel(%arg0: i32, %arg1: memref<8x32xf32, #tpu.memory_space<vmem>>, %arg2: memref<4x32x32xf32, #tpu.memory_space<vmem>>, %arg3: memref<4x1x32xf32, #tpu.memory_space<vmem>>, %arg4: memref<8x32xf32, #tpu.memory_space<vmem>>) attributes {dimension_semantics = [#tpu.dimension_semantics<parallel>], iteration_bounds = array<i64: 2>, scalar_prefetch = 0 : i64, scratch_operands = 0 : i64, tpu.core_type = #tpu.core_type<tc>, window_params = [{transform_indices = @transform_0, window_bounds = array<i64: 8, 32>}, {pipeline_mode = #tpu.pipeline_mode<synchronous>, transform_indices = @transform_1, window_bounds = array<i64: 4, 32, 32>}, {pipeline_mode = #tpu.pipeline_mode<synchronous>, transform_indices = @transform_2, window_bounds = array<i64: 4, 1, 32>}, {transform_indices = @transform_3, window_bounds = array<i64: 8, 32>}]} {
    %c0 = arith.constant 0 : index
    %c0_0 = arith.constant 0 : index
    %0 = vector.load %arg1[%c0, %c0_0] : memref<8x32xf32, #tpu.memory_space<vmem>>, vector<8x32xf32>
    %c0_1 = arith.constant 0 : index
    %c0_2 = arith.constant 0 : index
    %c0_3 = arith.constant 0 : index
    %1 = vector.load %arg2[%c0_1, %c0_2, %c0_3] : memref<4x32x32xf32, #tpu.memory_space<vmem>>, vector<1x32x32xf32>
    %2 = vector.shape_cast %1 : vector<1x32x32xf32> to vector<32x32xf32>
    %c0_4 = arith.constant 0 : index
    %c0_5 = arith.constant 0 : index
    %c0_6 = arith.constant 0 : index
    %3 = vector.load %arg3[%c0_4, %c0_5, %c0_6] : memref<4x1x32xf32, #tpu.memory_space<vmem>>, vector<1x1x32xf32>
    %4 = vector.shape_cast %3 : vector<1x1x32xf32> to vector<1x32xf32>
    %cst = arith.constant dense<0.000000e+00> : vector<8x32xf32>
    %5 = tpu.matmul %0, %2, %cst {dimension_numbers = #tpu.dot_dimension_numbers<[1], [0], [0], [1], [0, 0, 1, 1], [], []>} : vector<8x32xf32>, vector<32x32xf32>, vector<8x32xf32> -> vector<8x32xf32>
    %6 = vector.broadcast %4 : vector<1x32xf32> to vector<8x32xf32>
    %7 = arith.addf %5, %6 : vector<8x32xf32>
    %8 = math.tanh %7 : vector<8x32xf32>
    %9 = arith.mulf %8, %0 : vector<8x32xf32>
    %cst_7 = arith.constant dense<0.000000e+00> : vector<8xf32>
    %10 = vector.multi_reduction <add>, %9, %cst_7 [1] : vector<8x32xf32> to vector<8xf32>
    %11 = vector.shape_cast %10 : vector<8xf32> to vector<8x1xf32>
    %12 = vector.broadcast %11 : vector<8x1xf32> to vector<8x32xf32>
    %13 = arith.mulf %12, %0 : vector<8x32xf32>
    %14 = arith.subf %8, %13 : vector<8x32xf32>
    %15 = arith.mulf %14, %14 : vector<8x32xf32>
    %cst_8 = arith.constant dense<0.000000e+00> : vector<8xf32>
    %16 = vector.multi_reduction <add>, %15, %cst_8 [1] : vector<8x32xf32> to vector<8xf32>
    %17 = vector.shape_cast %16 : vector<8xf32> to vector<8x1xf32>
    %cst_9 = arith.constant 9.99999996E-13 : f32
    %18 = vector.broadcast %cst_9 : f32 to vector<8x1xf32>
    %19 = arith.addf %17, %18 : vector<8x1xf32>
    %20 = math.rsqrt %19 : vector<8x1xf32>
    %21 = arith.mulf %17, %20 : vector<8x1xf32>
    %22 = math.cos %21 : vector<8x1xf32>
    %23 = math.sin %21 : vector<8x1xf32>
    %24 = vector.broadcast %22 : vector<8x1xf32> to vector<8x32xf32>
    %25 = arith.mulf %24, %0 : vector<8x32xf32>
    %26 = arith.mulf %23, %20 : vector<8x1xf32>
    %27 = vector.broadcast %26 : vector<8x1xf32> to vector<8x32xf32>
    %28 = arith.mulf %27, %14 : vector<8x32xf32>
    %29 = arith.addf %25, %28 : vector<8x32xf32>
    %30 = arith.mulf %29, %29 : vector<8x32xf32>
    %cst_10 = arith.constant dense<0.000000e+00> : vector<8xf32>
    %31 = vector.multi_reduction <add>, %30, %cst_10 [1] : vector<8x32xf32> to vector<8xf32>
    %32 = vector.shape_cast %31 : vector<8xf32> to vector<8x1xf32>
    %cst_11 = arith.constant 9.99999996E-13 : f32
    %33 = vector.broadcast %cst_11 : f32 to vector<8x1xf32>
    %34 = arith.addf %32, %33 : vector<8x1xf32>
    %35 = math.rsqrt %34 : vector<8x1xf32>
    %36 = vector.broadcast %35 : vector<8x1xf32> to vector<8x32xf32>
    %37 = arith.mulf %29, %36 : vector<8x32xf32>
    %c1 = arith.constant 1 : index
    %c0_12 = arith.constant 0 : index
    %c0_13 = arith.constant 0 : index
    %38 = vector.load %arg2[%c1, %c0_12, %c0_13] : memref<4x32x32xf32, #tpu.memory_space<vmem>>, vector<1x32x32xf32>
    %39 = vector.shape_cast %38 : vector<1x32x32xf32> to vector<32x32xf32>
    %c1_14 = arith.constant 1 : index
    %c0_15 = arith.constant 0 : index
    %c0_16 = arith.constant 0 : index
    %40 = vector.load %arg3[%c1_14, %c0_15, %c0_16] : memref<4x1x32xf32, #tpu.memory_space<vmem>>, vector<1x1x32xf32>
    %41 = vector.shape_cast %40 : vector<1x1x32xf32> to vector<1x32xf32>
    %cst_17 = arith.constant dense<0.000000e+00> : vector<8x32xf32>
    %42 = tpu.matmul %37, %39, %cst_17 {dimension_numbers = #tpu.dot_dimension_numbers<[1], [0], [0], [1], [0, 0, 1, 1], [], []>} : vector<8x32xf32>, vector<32x32xf32>, vector<8x32xf32> -> vector<8x32xf32>
    %43 = vector.broadcast %41 : vector<1x32xf32> to vector<8x32xf32>
    %44 = arith.addf %42, %43 : vector<8x32xf32>
    %45 = math.tanh %44 : vector<8x32xf32>
    %46 = arith.mulf %45, %37 : vector<8x32xf32>
    %cst_18 = arith.constant dense<0.000000e+00> : vector<8xf32>
    %47 = vector.multi_reduction <add>, %46, %cst_18 [1] : vector<8x32xf32> to vector<8xf32>
    %48 = vector.shape_cast %47 : vector<8xf32> to vector<8x1xf32>
    %49 = vector.broadcast %48 : vector<8x1xf32> to vector<8x32xf32>
    %50 = arith.mulf %49, %37 : vector<8x32xf32>
    %51 = arith.subf %45, %50 : vector<8x32xf32>
    %52 = arith.mulf %51, %51 : vector<8x32xf32>
    %cst_19 = arith.constant dense<0.000000e+00> : vector<8xf32>
    %53 = vector.multi_reduction <add>, %52, %cst_19 [1] : vector<8x32xf32> to vector<8xf32>
    %54 = vector.shape_cast %53 : vector<8xf32> to vector<8x1xf32>
    %cst_20 = arith.constant 9.99999996E-13 : f32
    %55 = vector.broadcast %cst_20 : f32 to vector<8x1xf32>
    %56 = arith.addf %54, %55 : vector<8x1xf32>
    %57 = math.rsqrt %56 : vector<8x1xf32>
    %58 = arith.mulf %54, %57 : vector<8x1xf32>
    %59 = math.cos %58 : vector<8x1xf32>
    %60 = math.sin %58 : vector<8x1xf32>
    %61 = vector.broadcast %59 : vector<8x1xf32> to vector<8x32xf32>
    %62 = arith.mulf %61, %37 : vector<8x32xf32>
    %63 = arith.mulf %60, %57 : vector<8x1xf32>
    %64 = vector.broadcast %63 : vector<8x1xf32> to vector<8x32xf32>
    %65 = arith.mulf %64, %51 : vector<8x32xf32>
    %66 = arith.addf %62, %65 : vector<8x32xf32>
    %67 = arith.mulf %66, %66 : vector<8x32xf32>
    %cst_21 = arith.constant dense<0.000000e+00> : vector<8xf32>
    %68 = vector.multi_reduction <add>, %67, %cst_21 [1] : vector<8x32xf32> to vector<8xf32>
    %69 = vector.shape_cast %68 : vector<8xf32> to vector<8x1xf32>
    %cst_22 = arith.constant 9.99999996E-13 : f32
    %70 = vector.broadcast %cst_22 : f32 to vector<8x1xf32>
    %71 = arith.addf %69, %70 : vector<8x1xf32>
    %72 = math.rsqrt %71 : vector<8x1xf32>
    %73 = vector.broadcast %72 : vector<8x1xf32> to vector<8x32xf32>
    %74 = arith.mulf %66, %73 : vector<8x32xf32>
    %c2 = arith.constant 2 : index
    %c0_23 = arith.constant 0 : index
    %c0_24 = arith.constant 0 : index
    %75 = vector.load %arg2[%c2, %c0_23, %c0_24] : memref<4x32x32xf32, #tpu.memory_space<vmem>>, vector<1x32x32xf32>
    %76 = vector.shape_cast %75 : vector<1x32x32xf32> to vector<32x32xf32>
    %c2_25 = arith.constant 2 : index
    %c0_26 = arith.constant 0 : index
    %c0_27 = arith.constant 0 : index
    %77 = vector.load %arg3[%c2_25, %c0_26, %c0_27] : memref<4x1x32xf32, #tpu.memory_space<vmem>>, vector<1x1x32xf32>
    %78 = vector.shape_cast %77 : vector<1x1x32xf32> to vector<1x32xf32>
    %cst_28 = arith.constant dense<0.000000e+00> : vector<8x32xf32>
    %79 = tpu.matmul %74, %76, %cst_28 {dimension_numbers = #tpu.dot_dimension_numbers<[1], [0], [0], [1], [0, 0, 1, 1], [], []>} : vector<8x32xf32>, vector<32x32xf32>, vector<8x32xf32> -> vector<8x32xf32>
    %80 = vector.broadcast %78 : vector<1x32xf32> to vector<8x32xf32>
    %81 = arith.addf %79, %80 : vector<8x32xf32>
    %82 = math.tanh %81 : vector<8x32xf32>
    %83 = arith.mulf %82, %74 : vector<8x32xf32>
    %cst_29 = arith.constant dense<0.000000e+00> : vector<8xf32>
    %84 = vector.multi_reduction <add>, %83, %cst_29 [1] : vector<8x32xf32> to vector<8xf32>
    %85 = vector.shape_cast %84 : vector<8xf32> to vector<8x1xf32>
    %86 = vector.broadcast %85 : vector<8x1xf32> to vector<8x32xf32>
    %87 = arith.mulf %86, %74 : vector<8x32xf32>
    %88 = arith.subf %82, %87 : vector<8x32xf32>
    %89 = arith.mulf %88, %88 : vector<8x32xf32>
    %cst_30 = arith.constant dense<0.000000e+00> : vector<8xf32>
    %90 = vector.multi_reduction <add>, %89, %cst_30 [1] : vector<8x32xf32> to vector<8xf32>
    %91 = vector.shape_cast %90 : vector<8xf32> to vector<8x1xf32>
    %cst_31 = arith.constant 9.99999996E-13 : f32
    %92 = vector.broadcast %cst_31 : f32 to vector<8x1xf32>
    %93 = arith.addf %91, %92 : vector<8x1xf32>
    %94 = math.rsqrt %93 : vector<8x1xf32>
    %95 = arith.mulf %91, %94 : vector<8x1xf32>
    %96 = math.cos %95 : vector<8x1xf32>
    %97 = math.sin %95 : vector<8x1xf32>
    %98 = vector.broadcast %96 : vector<8x1xf32> to vector<8x32xf32>
    %99 = arith.mulf %98, %74 : vector<8x32xf32>
    %100 = arith.mulf %97, %94 : vector<8x1xf32>
    %101 = vector.broadcast %100 : vector<8x1xf32> to vector<8x32xf32>
    %102 = arith.mulf %101, %88 : vector<8x32xf32>
    %103 = arith.addf %99, %102 : vector<8x32xf32>
    %104 = arith.mulf %103, %103 : vector<8x32xf32>
    %cst_32 = arith.constant dense<0.000000e+00> : vector<8xf32>
    %105 = vector.multi_reduction <add>, %104, %cst_32 [1] : vector<8x32xf32> to vector<8xf32>
    %106 = vector.shape_cast %105 : vector<8xf32> to vector<8x1xf32>
    %cst_33 = arith.constant 9.99999996E-13 : f32
    %107 = vector.broadcast %cst_33 : f32 to vector<8x1xf32>
    %108 = arith.addf %106, %107 : vector<8x1xf32>
    %109 = math.rsqrt %108 : vector<8x1xf32>
    %110 = vector.broadcast %109 : vector<8x1xf32> to vector<8x32xf32>
    %111 = arith.mulf %103, %110 : vector<8x32xf32>
    %c3 = arith.constant 3 : index
    %c0_34 = arith.constant 0 : index
    %c0_35 = arith.constant 0 : index
    %112 = vector.load %arg2[%c3, %c0_34, %c0_35] : memref<4x32x32xf32, #tpu.memory_space<vmem>>, vector<1x32x32xf32>
    %113 = vector.shape_cast %112 : vector<1x32x32xf32> to vector<32x32xf32>
    %c3_36 = arith.constant 3 : index
    %c0_37 = arith.constant 0 : index
    %c0_38 = arith.constant 0 : index
    %114 = vector.load %arg3[%c3_36, %c0_37, %c0_38] : memref<4x1x32xf32, #tpu.memory_space<vmem>>, vector<1x1x32xf32>
    %115 = vector.shape_cast %114 : vector<1x1x32xf32> to vector<1x32xf32>
    %cst_39 = arith.constant dense<0.000000e+00> : vector<8x32xf32>
    %116 = tpu.matmul %111, %113, %cst_39 {dimension_numbers = #tpu.dot_dimension_numbers<[1], [0], [0], [1], [0, 0, 1, 1], [], []>} : vector<8x32xf32>, vector<32x32xf32>, vector<8x32xf32> -> vector<8x32xf32>
    %117 = vector.broadcast %115 : vector<1x32xf32> to vector<8x32xf32>
    %118 = arith.addf %116, %117 : vector<8x32xf32>
    %119 = math.tanh %118 : vector<8x32xf32>
    %120 = arith.mulf %119, %111 : vector<8x32xf32>
    %cst_40 = arith.constant dense<0.000000e+00> : vector<8xf32>
    %121 = vector.multi_reduction <add>, %120, %cst_40 [1] : vector<8x32xf32> to vector<8xf32>
    %122 = vector.shape_cast %121 : vector<8xf32> to vector<8x1xf32>
    %123 = vector.broadcast %122 : vector<8x1xf32> to vector<8x32xf32>
    %124 = arith.mulf %123, %111 : vector<8x32xf32>
    %125 = arith.subf %119, %124 : vector<8x32xf32>
    %126 = arith.mulf %125, %125 : vector<8x32xf32>
    %cst_41 = arith.constant dense<0.000000e+00> : vector<8xf32>
    %127 = vector.multi_reduction <add>, %126, %cst_41 [1] : vector<8x32xf32> to vector<8xf32>
    %128 = vector.shape_cast %127 : vector<8xf32> to vector<8x1xf32>
    %cst_42 = arith.constant 9.99999996E-13 : f32
    %129 = vector.broadcast %cst_42 : f32 to vector<8x1xf32>
    %130 = arith.addf %128, %129 : vector<8x1xf32>
    %131 = math.rsqrt %130 : vector<8x1xf32>
    %132 = arith.mulf %128, %131 : vector<8x1xf32>
    %133 = math.cos %132 : vector<8x1xf32>
    %134 = math.sin %132 : vector<8x1xf32>
    %135 = vector.broadcast %133 : vector<8x1xf32> to vector<8x32xf32>
    %136 = arith.mulf %135, %111 : vector<8x32xf32>
    %137 = arith.mulf %134, %131 : vector<8x1xf32>
    %138 = vector.broadcast %137 : vector<8x1xf32> to vector<8x32xf32>
    %139 = arith.mulf %138, %125 : vector<8x32xf32>
    %140 = arith.addf %136, %139 : vector<8x32xf32>
    %141 = arith.mulf %140, %140 : vector<8x32xf32>
    %cst_43 = arith.constant dense<0.000000e+00> : vector<8xf32>
    %142 = vector.multi_reduction <add>, %141, %cst_43 [1] : vector<8x32xf32> to vector<8xf32>
    %143 = vector.shape_cast %142 : vector<8xf32> to vector<8x1xf32>
    %cst_44 = arith.constant 9.99999996E-13 : f32
    %144 = vector.broadcast %cst_44 : f32 to vector<8x1xf32>
    %145 = arith.addf %143, %144 : vector<8x1xf32>
    %146 = math.rsqrt %145 : vector<8x1xf32>
    %147 = vector.broadcast %146 : vector<8x1xf32> to vector<8x32xf32>
    %148 = arith.mulf %140, %147 : vector<8x32xf32>
    %c0_45 = arith.constant 0 : index
    %c0_46 = arith.constant 0 : index
    %149 = vector.load %arg4[%c0_45, %c0_46] : memref<8x32xf32, #tpu.memory_space<vmem>>, vector<8x32xf32>
    tpu.vector_store %arg4[%c0_45, %c0_46], %148 {strides = array<i32>} : memref<8x32xf32, #tpu.memory_space<vmem>>, vector<8x32xf32>,
    return
  }
  func.func @transform_0(%arg0: i32) -> (i32, i32) {
    %c0_i32 = arith.constant 0 : i32
    %c0_i32_0 = arith.constant 0 : i32
    return %arg0, %c0_i32 : i32, i32
  }
  func.func @transform_1(%arg0: i32) -> (i32, i32, i32) {
    %c0_i32 = arith.constant 0 : i32
    %c0_i32_0 = arith.constant 0 : i32
    %c0_i32_1 = arith.constant 0 : i32
    %c0_i32_2 = arith.constant 0 : i32
    return %c0_i32, %c0_i32_0, %c0_i32_1 : i32, i32, i32
  }
  func.func @transform_2(%arg0: i32) -> (i32, i32, i32) {
    %c0_i32 = arith.constant 0 : i32
    %c0_i32_0 = arith.constant 0 : i32
    %c0_i32_1 = arith.constant 0 : i32
    %c0_i32_2 = arith.constant 0 : i32
    return %c0_i32, %c0_i32_0, %c0_i32_1 : i32, i32, i32
  }
  func.func @transform_3(%arg0: i32) -> (i32, i32) {
    %c0_i32 = arith.constant 0 : i32
    %c0_i32_0 = arith.constant 0 : i32
    return %arg0, %c0_i32 : i32, i32
  }
}

</mosaic_0001>

<bundles_post_ra>
// kernel: tpu_custom_call.1
= control target key start
LH: loop header
LB: loop body
LE: loop exit
PB: predicated region body
PF: predicated region fallthrough
CT: control target
= control target key end

     0   :  { %8 = vsyncpa [#allocation3], 0  ;;  %s2690_s0 = inlined_call_operand.hbm [shape: f32[16,32], index: 0, kind: input, shape index: {}]   ;;  %s2691_s1 = inlined_call_operand.hbm [shape: f32[4,32,32], index: 1, kind: input, shape index: {}]   ;;  %s2692_s2 = inlined_call_operand.hbm [shape: f32[4,1,32], index: 2, kind: input, shape index: {}]   ;;  %s2693_s3 = inlined_call_operand.hbm [shape: f32[16,32], index: 3, kind: output, shape index: {}]  }
   0x1   :  { %10 = vsyncpa [#allocation3 + $0x1], 0 }
   0x2   :  { %11 = vsyncpa [#allocation6], 0 }
   0x3   :  { %12 = vsyncpa [#allocation4], 0 }
   0x4   :  { %14 = vsyncpa [#allocation4 + $0x1], 0  ;;  %s2212_s12 = smov 0   ;;  %s2214_s13 = smov 0  }
   0x5   :  { %s2216_s14 = smov 0   ;;  %s2218_s15 = smov 0  }
   0x6 LB: > { %s130_s18 = sshll.u32 %s2691_s1, 4  ;;  %s2236_s19 = sadd.s32 4294967295, %s2177_s15   ;;  %s2177_s15 = sphi %s2218_s15, %s2704_s15   ;;  %s2173_s14 = sphi %s2216_s14, %s2703_s14   ;;  %s2169_s13 = sphi %s2214_s13, %s2702_s13   ;;  %s2165_s12 = sphi %s2212_s12, %s2701_s12   ;;  %s131_s18 = int_to_ptr.hbm [resolvable:$true] %s130_s18 }
   0x7   : > { %p1868_p0 = scmp.ge.s32.totalorder %s2177_s15, 1  ;;  %p41_p1 = scmp.eq.s32.totalorder %s2236_s19, 0 }
   0x8   : > { %p119_p2 = scmp.lt.s32.totalorder %s2177_s15, 3  ;;  %s2179_s21 = smov [#allocation5]  }
   0x9   : > { %s132_s22 = sshll.u32 %s2179_s21, 4  ;;  %s144_s25 = sshll.u32 %s2692_s2, 4  ;;  %s133_s22 = int_to_ptr.vmem [resolvable:$true] %s132_s22  ;;  %s145_s25 = int_to_ptr.hbm [resolvable:$true] %s144_s25 }
   0xa   : > { %p2241_p3 = pnand %p1868_p0, %p119_p2  ;;  %s2180_s26 = smov [#allocation7]  }
   0xb   : > { %s146_s27 = sshll.u32 %s2180_s26, 4  ;;  %s2181_s28 = smov 128   ;;  %s147_s27 = int_to_ptr.vmem [resolvable:$true] %s146_s27 }
   0xc   : > { %p1923_p4 = pneg %p2241_p3  ;;  %s2182_s29 = smov 8  }
   0xd   : > { %s2183_s30 = smov 16   ;;  %s2184_s4 = smov 1  }
   0xe   : > { %p1924_p6 = pnand %p1923_p4, %p41_p1  ;;  %s1867_s5 = sadd.s32 4294967294, %s2177_s15  }
   0xf   : > { %s2255_s6 = sadd.s32 1, %s2177_s15   ;;  %s27_s8 = sadd.s32 1, %s2173_s14 }
  0x10   : > { %1926 = dma.hbm_to_vmem [thread:$0]  (!%p1924_p6), %s131_s18, 2048, %s133_s22, [#allocation6], %s2181_s28, %s2181_s28, %s2182_s29  }
  0x11   : > { %1929 = dma.hbm_to_vmem [thread:$0]  (!%p1924_p6), %s145_s25, 64, %s147_s27, [#allocation6], %s2183_s30, %s2183_s30, %s2184_s4  }
  0x12   : > { %s24_s7 = ssub.s32 %s2177_s15, %s2255_s6  ;;  %p34_p8 = scmp.ne.s32.totalorder %s2173_s14, %s2169_s13 }
  0x13   : > { %p25_p7 = scmp.eq.s32.totalorder %s24_s7, 0  ;;  %p35_p9 = scmp.eq.s32.totalorder %s2177_s15, 0 }
  0x14   : > { %p40_p10 = scmp.ne.s32.totalorder %s2169_s13, %s2165_s12  ;;  %p106_p13 = scmp.eq.s32.totalorder %s2236_s19, 1 }
  0x15   : > { %s2266_s9 = scalar_select %p25_p7, %s2173_s14, %s27_s8  }
  0x16   : > { %p2268_p11 = por %p35_p9, %p34_p8  ;;  %p2274_p12 = por %p41_p1, %p40_p10 }
  0x17   : > { %p112_p0 = scmp.eq.s32.totalorder %s1867_s5, 1  ;;  %p1940_p2 = scmp.lt.s32.totalorder %s2177_s15, 2 }
  0x18   : > { %s160_s16 = sand.u32 1, %s2173_s14   ;;  %p2281_p4 = por %p106_p13, %p34_p8 }
  0x19   : > { %p2285_p6 = por %p112_p0, %p40_p10  ;;  %s1872_s21 = sshll.u32 %s160_s16, 3 }
  0x1a   : > { %s1873_s22 = sshll.u32 %s2177_s15, 3  ;;  %s164_s26 = scalar_lea.vmem [#allocation2], %s1872_s21 }
  0x1b   : > { %s168_s25 = scalar_lea.hbm %s2690_s0, %s1873_s22  ;;  %s172_s27 = sshll.u32 %s164_s26, 4  ;;  %s173_s27 = int_to_ptr.vmem [resolvable:$true] %s172_s27 }
  0x1c   : > { %s170_s28 = sshll.u32 %s168_s25, 4  ;;  %p2295_p7 = pnand %p1940_p2, %p2268_p11  ;;  %s171_s28 = int_to_ptr.hbm [resolvable:$true] %s170_s28 }
  0x1d   : > { %s161_s30 = scalar_lea.sflag [#allocation3], %s160_s16  ;;  %s2077_s4 = sshra.s32 %s171_s28, 4  ;;  %s2078_s4 = int_to_ptr.hbm [resolvable:$true] %s2077_s4 }
  0x1e   : > { %s2079_s5 = scalar_lea.hbm %s2078_s4, 8  ;;  %p2081_p9 = pneg %p2295_p7 }
  0x1f   : > { %p2080_p8 = scmp.ne.s32.totalorder %s2078_s4, %s2079_s5  ;;  %s2084_s21 = scalar_lea.hbm %s2690_s0, 16 }
  0x20   : > { %p2085_p11 = scmp.lt.s32.totalorder %s2078_s4, %s2690_s0  ;;  %p2086_p0 = scmp.lt.s32.totalorder %s2084_s21, %s2079_s5 }
  0x21   : > { %p2082_p10 = pnand %p2081_p9, %p2080_p8 }
  0x22   : > { %p2087_p2 = por %p2086_p0, %p2085_p11 }
  0x23   : > { %p2083_p13 = pneg %p2082_p10 }
  0x25   : > { %p2088_p5 = pnand %p2087_p2, %p2083_p13 }
  0x27   : > { %2091 = shalt.err (!%p2088_p5)
}
  0x28   : > { %1933 = dma.hbm_to_vmem [thread:$0]  (!%p2295_p7), %s171_s28, 128, %s173_s27, %s161_s30  }
  0x29   : > { %181 = sbr.rel (%p2241_p3) target bundleno = 2640 (0xa50), region = 32  ;;  %s2312_s16 = sand.u32 (!%p2241_p3), 1, %s2169_s13  }
  0x2a   : > { %s1875_s23 = sshll.u32 (!%p2241_p3), %s2312_s16, 3  ;;  %s184_s24 = scalar_lea.sflag (!%p2241_p3), [#allocation3], %s2312_s16 }
  0x2b   : > { %s187_s25 = scalar_lea.vmem (!%p2241_p3), [#allocation2], %s1875_s23 }
  0x2e   : > { %2152 = dma.done.wait (%p2274_p12), %s184_s24, 128  }
  0x2f   : > { %2154 = vsyncadd (%p2274_p12), %s184_s24, 4294967168 }
  0x30   : > { %2156 = dma.done.wait (%p41_p1), [#allocation6], 2112  }
  0x31   : > { %2158 = vsyncadd (%p41_p1), [#allocation6], 4294965184  ;;  %v225_v0 = vld [vmem:[#allocation5 + $0x18] sm:$0xff]  ;;  %v224_v1 = vld [vmem:[#allocation5 + $0x10] sm:$0xff]  ;;  %vm230_vm0 = vcmask 261120   ;;  %s1908_s20 = sshll.u32 %s2236_s19, 3 }
  0x32   : > { %246 = vmatpush.msra.mxu0 %v225_v0  ;;  %v223_v2 = vld [vmem:[#allocation5 + $0x8] sm:$0xff]  ;;  %v222_v3 = vld [vmem:[#allocation5] sm:$0xff]  ;;  %v2326_v4 = vld [vmem:[%s187_s25] sm:$0xff]  ;;  %v2185_v37 = vmov 683565275   ;;  %s1773_s27 = scalar_lea.hbm %s2693_s3, %s1908_s20  ;;  %s220_s28 = scalar_lea.vmem [#allocation8], %s1875_s23 }
  0x33   : > { %v1989_v5 = vld [vmem:[#allocation7] ss:$0 sm:$0xff]  ;;  %v2186_v39 = vmov 2475754826   ;;  %v2187_v42 = vmov 2131351028  }
  0x34   : > { %247 = vmatpush.msra.mxu0 %v224_v1  ;;  %v2188_v45 = vmov 2102212464   ;;  %v2189_v48 = vmov 920167782   ;;  %v2190_v51 = vmov 1326507024  }
  0x35   : > { %s1775_s29 = sshll.u32 %s220_s28, 4  ;;  %s1777_s30 = sshll.u32 %s1773_s27, 4  ;;  %s1776_s29 = int_to_ptr.vmem [resolvable:$true] %s1775_s29  ;;  %s1778_s30 = int_to_ptr.hbm [resolvable:$true] %s1777_s30 }
  0x36   : > { %248 = vmatpush.msra.mxu0 %v223_v2  ;;  %s1763_s19 = scalar_lea.sflag [#allocation4], %s2312_s16  ;;  %s2121_s4 = sshra.s32 %s1778_s30, 4  ;;  %s2122_s4 = int_to_ptr.hbm [resolvable:$true] %s2121_s4 }
  0x37   : > { %s2123_s5 = scalar_lea.hbm %s2122_s4, 8  ;;  %s2127_s21 = scalar_lea.hbm %s2693_s3, 16 }
  0x38   : > { %249 = vmatpush.msra.mxu0 %v222_v3  ;;  %p2124_p1 = scmp.ne.s32.totalorder %s2122_s4, %s2123_s5  ;;  %p2128_p12 = scmp.lt.s32.totalorder %s2122_s4, %s2693_s3 }
  0x39   : > { %1879 = vmatmul.msk.f32.vlgmr.msra.gmra.mxu0 %vm230_vm0, %v2326_v4  ;;  %p2129_p7 = scmp.lt.s32.totalorder %s2127_s21, %s2123_s5 }
  0x3a   : > { %p2125_p3 = pnand %p2124_p1, %p2281_p4 }
  0x3b   : > { %p2130_p8 = por %p2129_p7, %p2128_p12 }
  0x3c   : > { %p2126_p5 = pneg %p2125_p3 }
  0x3e   : > { %p2131_p9 = pnand %p2130_p8, %p2126_p5 }
  0xb6   : > { %v251_v6 = vpop.f32.mrf.mxu0 }
  0xb7   : > { %v252_v7 = vadd.f32 %v1989_v5, %v251_v6 }
  0xb9   : > { %1993 = vtanh.f32 %v252_v7 }
  0xbf   : > { %v1994_v8 = vpop.eup %1993 }
  0xc0   : > { %v255_v9 = vmul.f32 %v1994_v8, %v2326_v4 }
  0xc2   : > { %v256_v10 = vsel %vm230_vm0, %v255_v9, 0.0 }
  0xc3   : > { %257 = vadd.xlane.f32.xlu0 %v256_v10 }
 0x136   : > { %v258_v11 = vpop.xlane.xlu0 %257 }
 0x137   : > { %v259_v12 = vmul.f32 %v258_v11, %v2326_v4 }
 0x139   : > { %v2333_v13 = vsub.f32 %v1994_v8, %v259_v12 }
 0x13b   : > { %v261_v14 = vmul.f32 %v2333_v13, %v2333_v13 }
 0x13d   : > { %v262_v15 = vsel %vm230_vm0, %v261_v14, 0.0 }
 0x13e   : > { %263 = vadd.xlane.f32.xlu0 %v262_v15 }
 0x1b1   : > { %v264_v16 = vpop.xlane.xlu0 %263 }
 0x1b2   : > { %v265_v17 = vadd.f32 1e-12, %v264_v16 }
 0x1b4   : > { %1995 = vrsqrt.f32 %v265_v17  ;;  %vm272_vm2 = vweird.f32 %v265_v17 }
 0x1ba   : > { %v1996_v18 = vpop.eup %1995 }
 0x1bb   : > { %v267_v19 = vmul.f32 %v1996_v18, %v265_v17  ;;  %vm273_vm1 = vweird.f32 %v1996_v18 }
 0x1bc   : > { %vm274_vm3 = vmor %vm272_vm2, %vm273_vm1 }
 0x1bd   : > { %v268_v20 = vmul.f32 %v1996_v18, %v267_v19 }
 0x1bf   : > { %v269_v21 = vmul.f32 0.5, %v268_v20 }
 0x1c1   : > { %v270_v22 = vsub.f32 1.5, %v269_v21 }
 0x1c3   : > { %v271_v23 = vmul.f32 %v1996_v18, %v270_v22 }
 0x1c5   : > { %v2338_v24 = vsel %vm274_vm3, %v1996_v18, %v271_v23  ;;  %v2191_v23 = vmov 0  }
 0x1c6   : > { %v2341_v25 = vmul.f32 %v2338_v24, %v264_v16 }
 0x1c8   : > { %v280_v26 = vand.u32 2139095040, %v2341_v25  ;;  %v277_v29 = vand.u32 2147483647, %v2341_v25  ;;  %vm279_vm1 = vcmp.lt.s32.totalorder %v2341_v25, 0 }
 0x1ca   : > { %v281_v27 = vshrl.u32 %v280_v26, 23  ;;  %v284_v31 = vand.u32 8388607, %v277_v29  ;;  %vm278_vm2 = vcmp.le.f32.partialorder %v277_v29, 0.7853982 }
 0x1cc   : > { %v1880_v28 = vadd.s32 4294967169, %v281_v27  ;;  %v285_v35 = vor.u32 8388608, %v284_v31 }
 0x1ce   : > { %v287_v30 = vadd.s32 1, %v1880_v28  ;;  %v2367_v58 = vshll.u32 %v285_v35, 8 }
 0x1d0   : > { %vm288_vm4 = vcmp.gt.s32.totalorder %v287_v30, 0  ;;  %v326_v3 = vand.u32 65535, %v2367_v58  ;;  %v327_v5 = vshrl.u32 %v2367_v58, 16 }
 0x1d1   : > { %v289_v32 = vsel %vm288_vm4, %v287_v30, 0 }
 0x1d2   : > { %v291_v33 = vand.u32 31, %v289_v32  ;;  %v2349_v36 = vshrl.u32 %v289_v32, 5 }
 0x1d4   : > { %v2347_v34 = vsub.s32 32, %v291_v33  ;;  %v294_v38 = vshll.u32 %v2185_v37, %v291_v33  ;;  %v297_v40 = vshll.u32 %v2186_v39, %v291_v33  ;;  %v300_v44 = vshll.u32 %v2187_v42, %v291_v33 }
 0x1d5   : > { %v303_v47 = vshll.u32 %v2188_v45, %v291_v33  ;;  %v306_v50 = vshll.u32 %v2189_v48, %v291_v33  ;;  %vm309_vm5 = vcmp.lt.s32.totalorder %v2349_v36, 1  ;;  %vm312_vm6 = vcmp.lt.s32.totalorder %v2349_v36, 4 }
 0x1d6   : > { %v295_v41 = vshrl.u32 %v2186_v39, %v2347_v34  ;;  %v298_v43 = vshrl.u32 %v2187_v42, %v2347_v34  ;;  %v301_v46 = vshrl.u32 %v2188_v45, %v2347_v34  ;;  %v304_v49 = vshrl.u32 %v2189_v48, %v2347_v34 }
 0x1d7   : > { %v307_v52 = vshrl.u32 %v2190_v51, %v2347_v34  ;;  %vm311_vm7 = vcmp.lt.s32.totalorder %v2349_v36, 3  ;;  %vm310_vm8 = vcmp.lt.s32.totalorder %v2349_v36, 2 }
 0x1d8   : > { %v296_v53 = vor.u32 %v295_v41, %v294_v38  ;;  %v299_v54 = vor.u32 %v298_v43, %v297_v40  ;;  %v302_v55 = vor.u32 %v301_v46, %v300_v44  ;;  %v305_v56 = vor.u32 %v304_v49, %v303_v47 }
 0x1d9   : > { %v308_v57 = vor.u32 %v307_v52, %v306_v50  ;;  %v293_v38 = vshrl.u32 %v2185_v37, %v2347_v34 }
 0x1da   : > { %v317_v59 = vsel %vm309_vm5, %v296_v53, %v299_v54  ;;  %v321_v60 = vsel %vm309_vm5, %v299_v54, %v302_v55  ;;  %v318_v61 = vsel %vm312_vm6, %v305_v56, 920167782  ;;  %v314_v32 = vsel %vm312_vm6, %v302_v55, 2102212464 }
 0x1db   : > { %v322_v62 = vsel %vm312_vm6, %v308_v57, 1326507024  ;;  %v319_v63 = vsel %vm311_vm7, %v302_v55, %v318_v61  ;;  %v313_v47 = vsel %vm309_vm5, %v293_v38, %v296_v53  ;;  %v315_v49 = vsel %vm311_vm7, %v299_v54, %v314_v32 }
 0x1dc   : > { %v323_v0 = vsel %vm311_vm7, %v305_v56, %v322_v62  ;;  %v320_v1 = vsel %vm310_vm8, %v317_v59, %v319_v63  ;;  %v316_v34 = vsel %vm310_vm8, %v313_v47, %v315_v49 }
 0x1dd   : > { %v324_v2 = vsel %vm310_vm8, %v321_v60, %v323_v0  ;;  %v350_v8 = vand.u32 65535, %v320_v1  ;;  %v351_v9 = vshrl.u32 %v320_v1, 16  ;;  %v370_v62 = vmul.u32 %v2367_v58, %v316_v34 }
 0x1de   : > { %v328_v6 = vand.u32 65535, %v324_v2  ;;  %v329_v7 = vshrl.u32 %v324_v2, 16 }
 0x1df   : > { %v353_v12 = vmul.u32 %v351_v9, %v326_v3  ;;  %v354_v14 = vmul.u32 %v350_v8, %v327_v5  ;;  %v352_v18 = vmul.u32 %v350_v8, %v326_v3  ;;  %v355_v22 = vmul.u32 %v351_v9, %v327_v5 }
 0x1e0   : > { %v331_v10 = vmul.u32 %v329_v7, %v326_v3  ;;  %v332_v11 = vmul.u32 %v328_v6, %v327_v5  ;;  %v330_v15 = vmul.u32 %v328_v6, %v326_v3  ;;  %v333_v17 = vmul.u32 %v329_v7, %v327_v5 }
 0x1e1   : > { %v356_v19 = vshll.u32 %v353_v12, 16  ;;  %v358_v27 = vshll.u32 %v354_v14, 16  ;;  %v357_v44 = vshrl.u32 %v353_v12, 16  ;;  %v359_v55 = vshrl.u32 %v354_v14, 16 }
 0x1e2   : > { %v334_v16 = vshll.u32 %v331_v10, 16  ;;  %v336_v20 = vshll.u32 %v332_v11, 16  ;;  %v335_v40 = vshrl.u32 %v331_v10, 16  ;;  %v337_v50 = vshrl.u32 %v332_v11, 16 }
 0x1e3   : > { %vm360_vm10 = vc.u32 %v352_v18, %v356_v19  ;;  %v362_v28 = vadd.s32 %v356_v19, %v352_v18 }
 0x1e4   : > { %vm338_vm9 = vc.u32 %v330_v15, %v334_v16  ;;  %v340_v21 = vadd.s32 %v334_v16, %v330_v15  ;;  %v361_v31 = vsel %vm360_vm10, 1, %v2191_v23 }
 0x1e5   : > { %v339_v26 = vsel %vm338_vm9, 1, %v2191_v23  ;;  %v363_v35 = vadd.s32 %v361_v31, %v355_v22  ;;  %vm364_vm12 = vc.u32 %v362_v28, %v358_v27  ;;  %v366_v59 = vadd.s32 %v362_v28, %v358_v27 }
 0x1e6   : > { %v341_v30 = vadd.s32 %v339_v26, %v333_v17  ;;  %vm342_vm11 = vc.u32 %v340_v21, %v336_v20  ;;  %v365_v43 = vsel %vm364_vm12, 1, %v2191_v23  ;;  %vm420_vm9 = vweird.f32 %v2341_v25 }
 0x1e7   : > { %v343_v33 = vsel %vm342_vm11, 1, %v2191_v23  ;;  %v367_v46 = vadd.s32 %v365_v43, %v363_v35 }
 0x1e8   : > { %v345_v41 = vadd.s32 %v343_v33, %v341_v30 }
 0x1e9   : > { %v368_v56 = vadd.s32 %v367_v46, %v357_v44 }
 0x1ea   : > { %v346_v52 = vadd.s32 %v345_v41, %v335_v40 }
 0x1eb   : > { %v369_v60 = vadd.s32 %v368_v56, %v359_v55 }
 0x1ec   : > { %v347_v57 = vadd.s32 %v346_v52, %v337_v50 }
 0x1ed   : > { %v373_v61 = vadd.s32 1, %v369_v60 }
 0x1ee   : > { %vm372_vm13 = vc.u32 %v347_v57, %v366_v59  ;;  %v371_v36 = vadd.s32 %v366_v59, %v347_v57 }
 0x1ef   : > { %v374_v63 = vsel %vm372_vm13, %v373_v61, %v369_v60 }
 0x1f0   : > { %v375_v0 = vadd.s32 %v374_v63, %v370_v62 }
 0x1f2   : > { %v376_v53 = vadd.s32 536870912, %v375_v0 }
 0x1f4   : > { %v377_v1 = vshrl.u32 %v376_v53, 30 }
 0x1f6   : > { %v378_v2 = vshll.u32 %v377_v1, 30  ;;  %v401_v22 = vsub.s32 4, %v377_v1 }
 0x1f8   : > { %v379_v54 = vsub.s32 %v375_v0, %v378_v2  ;;  %v402_v31 = vsel %vm279_vm1, %v401_v22, %v377_v1 }
 0x1f9   : > { %v404_v35 = vsel %vm278_vm2, 0, %v402_v31 }
 0x1fa   : > { %vm380_vm14 = vcmp.lt.s32.totalorder %v379_v54, 0  ;;  %v381_v3 = vsub.s32 0, %v379_v54  ;;  %v575_v44 = vadd.s32 3, %v404_v35  ;;  %v421_v50 = vand.u32 3, %v404_v35 }
 0x1fc   : > { %v382_v5 = vsel %vm380_vm14, %v381_v3, %v379_v54  ;;  %v576_v52 = vand.u32 3, %v575_v44  ;;  %vm422_vm3 = vcmp.lt.s32.totalorder %v421_v50, 2  ;;  %vm423_vm4 = vcmp.eq.s32.totalorder %v421_v50, 0 }
 0x1fd   : > { %v383_v6 = vclz %v382_v5  ;;  %vm426_vm8 = vcmp.eq.s32.totalorder %v421_v50, 2 }
 0x1fe   : > { %vm577_vm5 = vcmp.lt.s32.totalorder %v576_v52, 2  ;;  %vm578_vm6 = vcmp.eq.s32.totalorder %v576_v52, 0  ;;  %vm581_vm7 = vcmp.eq.s32.totalorder %v576_v52, 2 }
 0x1ff   : > { %v1881_v7 = vadd.s32 4294967294, %v383_v6 }
 0x201   : > { %vm1882_vm15 = vcmp.lt.s32.totalorder %v1881_v7, 0 }
 0x202   : > { %v386_v8 = vsel %vm1882_vm15, 0, %v1881_v7  ;;  %v610_v7 = vld [vmem:[#allocation5 + $0x38] sm:$0xff] }
 0x203   : > { %v387_v9 = vsub.s32 32, %v386_v8  ;;  %v391_v10 = vsub.s32 4294967266, %v386_v8  ;;  %v388_v11 = vshll.u32 %v379_v54, %v386_v8  ;;  %631 = vmatpush.msra.mxu1 %v610_v7  ;;  %v609_v8 = vld [vmem:[#allocation5 + $0x30] sm:$0xff] }
 0x205   : > { %v389_v12 = vshrl.u32 %v371_v36, %v387_v9  ;;  %v392_v14 = vadd.s32 127, %v391_v10  ;;  %632 = vmatpush.msra.mxu1 %v609_v8  ;;  %v607_v36 = vld [vmem:[#allocation5 + $0x20] sm:$0xff] }
 0x207   : > { %v390_v58 = vor.u32 %v389_v12, %v388_v11  ;;  %v393_v15 = vshll.u32 %v392_v14, 23 }
 0x209   : > { %v394_v16 = vor.u32 4788187, %v393_v15  ;;  %v397_v18 = vcvt.s32.f32 %v390_v58 }
 0x20b   : > { %v395_v17 = vand.u32 2147483647, %v394_v16  ;;  %v1990_v16 = vld [vmem:[#allocation7 + $0x1] ss:$0 sm:$0xff] }
 0x20d   : > { %v398_v19 = vmul.f32 %v397_v18, %v395_v17 }
 0x20f   : > { %v399_v20 = vxor.u32 2147483648, %v398_v19 }
 0x211   : > { %v400_v21 = vsel %vm279_vm1, %v399_v20, %v398_v19 }
 0x212   : > { %v403_v26 = vsel %vm278_vm2, %v2341_v25, %v400_v21  ;;  %v608_v25 = vld [vmem:[#allocation5 + $0x28] sm:$0xff] }
 0x213   : > { %v405_v27 = vmul.f32 %v403_v26, %v403_v26  ;;  %633 = vmatpush.msra.mxu1 %v608_v25 }
 0x215   : > { %v406_v28 = vmul.f32 -0.001358992, %v405_v27  ;;  %v413_v30 = vmul.f32 -0.00019511016, %v405_v27  ;;  %634 = vmatpush.msra.mxu1 %v607_v36 }
 0x217   : > { %v407_v32 = vadd.f32 0.041655596, %v406_v28  ;;  %v414_v33 = vadd.f32 0.008332121, %v413_v30 }
 0x219   : > { %v408_v38 = vmul.f32 %v407_v32, %v405_v27  ;;  %v415_v40 = vmul.f32 %v414_v33, %v405_v27 }
 0x21b   : > { %v409_v41 = vadd.f32 -0.4999988, %v408_v38  ;;  %v416_v43 = vadd.f32 -0.16666654, %v415_v40 }
 0x21d   : > { %v410_v46 = vmul.f32 %v409_v41, %v405_v27  ;;  %v417_v47 = vmul.f32 %v416_v43, %v405_v27 }
 0x21f   : > { %v411_v49 = vadd.f32 1.0, %v410_v46  ;;  %v418_v29 = vadd.f32 1.0, %v417_v47 }
 0x221   : > { %v419_v55 = vmul.f32 %v418_v29, %v403_v26  ;;  %v427_v56 = vxor.u32 2147483648, %v411_v49 }
 0x223   : > { %v424_v57 = vxor.u32 2147483648, %v419_v55  ;;  %v583_v34 = vsel %vm581_vm7, %v427_v56, %v419_v55  ;;  %v428_v61 = vsel %vm426_vm8, %v427_v56, %v419_v55 }
 0x225   : > { %v580_v59 = vsel %vm578_vm6, %v411_v49, %v424_v57  ;;  %v425_v60 = vsel %vm423_vm4, %v411_v49, %v424_v57 }
 0x226   : > { %v584_v62 = vsel %vm577_vm5, %v580_v59, %v583_v34  ;;  %v429_v63 = vsel %vm422_vm3, %v425_v60, %v428_v61 }
 0x227   : > { %v585_v0 = vsel %vm420_vm9, nan, %v584_v62  ;;  %v430_v53 = vsel %vm420_vm9, nan, %v429_v63 }
 0x228   : > { %v587_v1 = vmul.f32 %v585_v0, %v2338_v24  ;;  %v586_v2 = vmul.f32 %v430_v53, %v2326_v4 }
 0x22a   : > { %v588_v54 = vmul.f32 %v587_v1, %v2333_v13 }
 0x22c   : > { %v589_v3 = vadd.f32 %v588_v54, %v586_v2 }
 0x22e   : > { %v590_v5 = vmul.f32 %v589_v3, %v589_v3 }
 0x230   : > { %v591_v6 = vsel %vm230_vm0, %v590_v5, 0.0 }
 0x231   : > { %592 = vadd.xlane.f32.xlu1 %v591_v6 }
 0x2a4   : > { %v593_v9 = vpop.xlane.xlu1 %592 }
 0x2a5   : > { %v594_v10 = vadd.f32 1e-12, %v593_v9 }
 0x2a7   : > { %1997 = vrsqrt.f32 %v594_v10  ;;  %vm601_vm11 = vweird.f32 %v594_v10 }
 0x2ad   : > { %v1998_v24 = vpop.eup %1997 }
 0x2ae   : > { %v596_v4 = vmul.f32 %v1998_v24, %v594_v10  ;;  %vm602_vm10 = vweird.f32 %v1998_v24 }
 0x2af   : > { %vm603_vm12 = vmor %vm601_vm11, %vm602_vm10 }
 0x2b0   : > { %v597_v11 = vmul.f32 %v1998_v24, %v596_v4 }
 0x2b2   : > { %v598_v13 = vmul.f32 0.5, %v597_v11 }
 0x2b4   : > { %v599_v12 = vsub.f32 1.5, %v598_v13 }
 0x2b6   : > { %v600_v14 = vmul.f32 %v1998_v24, %v599_v12 }
 0x2b8   : > { %v604_v58 = vsel %vm603_vm12, %v1998_v24, %v600_v14 }
 0x2b9   : > { %v2414_v15 = vmul.f32 %v604_v58, %v589_v3 }
 0x2bb   : > { %1886 = vmatmul.msk.f32.vlgmr.msra.gmra.mxu1 %vm230_vm0, %v2414_v15 }
 0x338   : > { %v636_v17 = vpop.f32.mrf.mxu1 }
 0x339   : > { %v637_v18 = vadd.f32 %v1990_v16, %v636_v17 }
 0x33b   : > { %1999 = vtanh.f32 %v637_v18 }
 0x341   : > { %v2000_v19 = vpop.eup %1999 }
 0x342   : > { %v640_v20 = vmul.f32 %v2000_v19, %v2414_v15 }
 0x344   : > { %v641_v21 = vsel %vm230_vm0, %v640_v20, 0.0 }
 0x345   : > { %642 = vadd.xlane.f32.xlu1 %v641_v21 }
 0x3b8   : > { %v643_v22 = vpop.xlane.xlu1 %642 }
 0x3b9   : > { %v644_v26 = vmul.f32 %v643_v22, %v2414_v15 }
 0x3bb   : > { %v2421_v27 = vsub.f32 %v2000_v19, %v644_v26 }
 0x3bd   : > { %v646_v28 = vmul.f32 %v2421_v27, %v2421_v27 }
 0x3bf   : > { %v647_v30 = vsel %vm230_vm0, %v646_v28, 0.0 }
 0x3c0   : > { %648 = vadd.xlane.f32.xlu2 %v647_v30 }
 0x433   : > { %v649_v31 = vpop.xlane.xlu2 %648 }
 0x434   : > { %v650_v32 = vadd.f32 1e-12, %v649_v31 }
 0x436   : > { %2001 = vrsqrt.f32 %v650_v32  ;;  %vm657_vm14 = vweird.f32 %v650_v32 }
 0x43c   : > { %v2002_v33 = vpop.eup %2001 }
 0x43d   : > { %v652_v35 = vmul.f32 %v2002_v33, %v650_v32  ;;  %vm658_vm13 = vweird.f32 %v2002_v33 }
 0x43e   : > { %vm659_vm15 = vmor %vm657_vm14, %vm658_vm13 }
 0x43f   : > { %v653_v38 = vmul.f32 %v2002_v33, %v652_v35 }
 0x441   : > { %v654_v40 = vmul.f32 0.5, %v653_v38 }
 0x443   : > { %v655_v41 = vsub.f32 1.5, %v654_v40 }
 0x445   : > { %v656_v43 = vmul.f32 %v2002_v33, %v655_v41 }
 0x447   : > { %v2426_v44 = vsel %vm659_vm15, %v2002_v33, %v656_v43 }
 0x448   : > { %v2429_v46 = vmul.f32 %v2426_v44, %v649_v31 }
 0x44a   : > { %v665_v47 = vand.u32 2139095040, %v2429_v46  ;;  %v662_v50 = vand.u32 2147483647, %v2429_v46  ;;  %vm664_vm13 = vcmp.lt.s32.totalorder %v2429_v46, 0 }
 0x44c   : > { %v666_v49 = vshrl.u32 %v665_v47, 23  ;;  %v669_v55 = vand.u32 8388607, %v662_v50  ;;  %vm663_vm14 = vcmp.le.f32.partialorder %v662_v50, 0.7853982 }
 0x44e   : > { %v1887_v29 = vadd.s32 4294967169, %v666_v49  ;;  %v670_v34 = vor.u32 8388608, %v669_v55 }
 0x450   : > { %v672_v52 = vadd.s32 1, %v1887_v29  ;;  %v2448_v9 = vshll.u32 %v670_v34, 8 }
 0x452   : > { %vm673_vm1 = vcmp.gt.s32.totalorder %v672_v52, 0  ;;  %v711_v16 = vand.u32 65535, %v2448_v9  ;;  %v712_v17 = vshrl.u32 %v2448_v9, 16 }
 0x453   : > { %v674_v56 = vsel %vm673_vm1, %v672_v52, 0 }
 0x454   : > { %v676_v57 = vand.u32 31, %v674_v56  ;;  %v2435_v60 = vshrl.u32 %v674_v56, 5 }
 0x456   : > { %v677_v59 = vsub.s32 32, %v676_v57  ;;  %v679_v61 = vshll.u32 %v2185_v37, %v676_v57  ;;  %v682_v62 = vshll.u32 %v2186_v39, %v676_v57  ;;  %v685_v53 = vshll.u32 %v2187_v42, %v676_v57 }
 0x457   : > { %v688_v2 = vshll.u32 %v2188_v45, %v676_v57  ;;  %v691_v3 = vshll.u32 %v2189_v48, %v676_v57  ;;  %vm694_vm2 = vcmp.lt.s32.totalorder %v2435_v60, 1  ;;  %vm697_vm3 = vcmp.lt.s32.totalorder %v2435_v60, 4 }
 0x458   : > { %v680_v63 = vshrl.u32 %v2186_v39, %v677_v59  ;;  %v683_v0 = vshrl.u32 %v2187_v42, %v677_v59  ;;  %v686_v1 = vshrl.u32 %v2188_v45, %v677_v59  ;;  %v689_v54 = vshrl.u32 %v2189_v48, %v677_v59 }
 0x459   : > { %v692_v5 = vshrl.u32 %v2190_v51, %v677_v59  ;;  %vm696_vm4 = vcmp.lt.s32.totalorder %v2435_v60, 3  ;;  %vm695_vm5 = vcmp.lt.s32.totalorder %v2435_v60, 2 }
 0x45a   : > { %v681_v6 = vor.u32 %v680_v63, %v679_v61  ;;  %v684_v7 = vor.u32 %v683_v0, %v682_v62  ;;  %v687_v8 = vor.u32 %v686_v1, %v685_v53  ;;  %v690_v25 = vor.u32 %v689_v54, %v688_v2 }
 0x45b   : > { %v693_v36 = vor.u32 %v692_v5, %v691_v3  ;;  %v678_v61 = vshrl.u32 %v2185_v37, %v677_v59 }
 0x45c   : > { %v702_v10 = vsel %vm694_vm2, %v681_v6, %v684_v7  ;;  %v706_v24 = vsel %vm694_vm2, %v684_v7, %v687_v8  ;;  %v703_v4 = vsel %vm697_vm3, %v690_v25, 920167782  ;;  %v699_v56 = vsel %vm697_vm3, %v687_v8, 2102212464 }
 0x45d   : > { %v707_v11 = vsel %vm697_vm3, %v693_v36, 1326507024  ;;  %v704_v13 = vsel %vm696_vm4, %v687_v8, %v703_v4  ;;  %v698_v2 = vsel %vm694_vm2, %v678_v61, %v681_v6  ;;  %v700_v54 = vsel %vm696_vm4, %v684_v7, %v699_v56 }
 0x45e   : > { %v708_v12 = vsel %vm696_vm4, %v690_v25, %v707_v11  ;;  %v705_v14 = vsel %vm695_vm5, %v702_v10, %v704_v13  ;;  %v701_v59 = vsel %vm695_vm5, %v698_v2, %v700_v54 }
 0x45f   : > { %v709_v58 = vsel %vm695_vm5, %v706_v24, %v708_v12  ;;  %v735_v20 = vand.u32 65535, %v705_v14  ;;  %v736_v21 = vshrl.u32 %v705_v14, 16  ;;  %v755_v11 = vmul.u32 %v2448_v9, %v701_v59 }
 0x460   : > { %v713_v18 = vand.u32 65535, %v709_v58  ;;  %v714_v19 = vshrl.u32 %v709_v58, 16 }
 0x461   : > { %v738_v28 = vmul.u32 %v736_v21, %v711_v16  ;;  %v739_v30 = vmul.u32 %v735_v20, %v712_v17  ;;  %v737_v35 = vmul.u32 %v735_v20, %v711_v16  ;;  %v740_v43 = vmul.u32 %v736_v21, %v712_v17 }
 0x462   : > { %v716_v22 = vmul.u32 %v714_v19, %v711_v16  ;;  %v717_v26 = vmul.u32 %v713_v18, %v712_v17  ;;  %v715_v31 = vmul.u32 %v713_v18, %v711_v16  ;;  %v718_v33 = vmul.u32 %v714_v19, %v712_v17 }
 0x463   : > { %v741_v38 = vshll.u32 %v738_v28, 16  ;;  %v743_v49 = vshll.u32 %v739_v30, 16  ;;  %v742_v53 = vshrl.u32 %v738_v28, 16  ;;  %v744_v8 = vshrl.u32 %v739_v30, 16 }
 0x464   : > { %v719_v32 = vshll.u32 %v716_v22, 16  ;;  %v721_v40 = vshll.u32 %v717_v26, 16  ;;  %v720_v62 = vshrl.u32 %v716_v22, 16  ;;  %v722_v3 = vshrl.u32 %v717_v26, 16 }
 0x465   : > { %vm745_vm7 = vc.u32 %v737_v35, %v741_v38  ;;  %v747_v29 = vadd.s32 %v741_v38, %v737_v35 }
 0x466   : > { %vm723_vm6 = vc.u32 %v715_v31, %v719_v32  ;;  %v725_v41 = vadd.s32 %v719_v32, %v715_v31  ;;  %v746_v55 = vsel %vm745_vm7, 1, %v2191_v23 }
 0x467   : > { %v724_v47 = vsel %vm723_vm6, 1, %v2191_v23  ;;  %v748_v34 = vadd.s32 %v746_v55, %v740_v43  ;;  %vm749_vm9 = vc.u32 %v747_v29, %v743_v49  ;;  %v751_v10 = vadd.s32 %v747_v29, %v743_v49 }
 0x468   : > { %v726_v52 = vadd.s32 %v724_v47, %v718_v33  ;;  %vm727_vm8 = vc.u32 %v725_v41, %v721_v40  ;;  %v750_v0 = vsel %vm749_vm9, 1, %v2191_v23  ;;  %vm805_vm6 = vweird.f32 %v2429_v46 }
 0x469   : > { %v728_v57 = vsel %vm727_vm8, 1, %v2191_v23  ;;  %v752_v1 = vadd.s32 %v750_v0, %v748_v34 }
 0x46a   : > { %v730_v63 = vadd.s32 %v728_v57, %v726_v52 }
 0x46b   : > { %v753_v25 = vadd.s32 %v752_v1, %v742_v53 }
 0x46c   : > { %v731_v5 = vadd.s32 %v730_v63, %v720_v62 }
 0x46d   : > { %v754_v24 = vadd.s32 %v753_v25, %v744_v8 }
 0x46e   : > { %v732_v36 = vadd.s32 %v731_v5, %v722_v3 }
 0x46f   : > { %v758_v4 = vadd.s32 1, %v754_v24 }
 0x470   : > { %vm757_vm10 = vc.u32 %v732_v36, %v751_v10  ;;  %v756_v60 = vadd.s32 %v751_v10, %v732_v36 }
 0x471   : > { %v759_v13 = vsel %vm757_vm10, %v758_v4, %v754_v24 }
 0x472   : > { %v760_v12 = vadd.s32 %v759_v13, %v755_v11 }
 0x474   : > { %v761_v6 = vadd.s32 536870912, %v760_v12 }
 0x476   : > { %v762_v14 = vshrl.u32 %v761_v6, 30 }
 0x478   : > { %v763_v58 = vshll.u32 %v762_v14, 30  ;;  %v786_v43 = vsub.s32 4, %v762_v14 }
 0x47a   : > { %v764_v7 = vsub.s32 %v760_v12, %v763_v58  ;;  %v787_v55 = vsel %vm664_vm13, %v786_v43, %v762_v14 }
 0x47b   : > { %v789_v34 = vsel %vm663_vm14, 0, %v787_v55 }
 0x47c   : > { %vm765_vm11 = vcmp.lt.s32.totalorder %v764_v7, 0  ;;  %v766_v16 = vsub.s32 0, %v764_v7  ;;  %v960_v53 = vadd.s32 3, %v789_v34  ;;  %v806_v3 = vand.u32 3, %v789_v34 }
 0x47e   : > { %v767_v17 = vsel %vm765_vm11, %v766_v16, %v764_v7  ;;  %v961_v5 = vand.u32 3, %v960_v53  ;;  %vm807_vm15 = vcmp.lt.s32.totalorder %v806_v3, 2  ;;  %vm808_vm1 = vcmp.eq.s32.totalorder %v806_v3, 0 }
 0x47f   : > { %v768_v18 = vclz %v767_v17  ;;  %vm811_vm2 = vcmp.eq.s32.totalorder %v806_v3, 2 }
 0x480   : > { %vm962_vm3 = vcmp.lt.s32.totalorder %v961_v5, 2  ;;  %vm963_vm4 = vcmp.eq.s32.totalorder %v961_v5, 0  ;;  %vm966_vm5 = vcmp.eq.s32.totalorder %v961_v5, 2 }
 0x481   : > { %v1888_v19 = vadd.s32 4294967294, %v768_v18 }
 0x483   : > { %vm1889_vm12 = vcmp.lt.s32.totalorder %v1888_v19, 0 }
 0x484   : > { %v771_v20 = vsel %vm1889_vm12, 0, %v1888_v19  ;;  %v995_v19 = vld [vmem:[#allocation5 + $0x58] sm:$0xff] }
 0x485   : > { %v772_v21 = vsub.s32 32, %v771_v20  ;;  %v776_v22 = vsub.s32 4294967266, %v771_v20  ;;  %v773_v26 = vshll.u32 %v764_v7, %v771_v20  ;;  %1016 = vmatpush.msra.mxu2 %v995_v19  ;;  %v994_v20 = vld [vmem:[#allocation5 + $0x50] sm:$0xff] }
 0x487   : > { %v774_v28 = vshrl.u32 %v756_v60, %v772_v21  ;;  %v777_v30 = vadd.s32 127, %v776_v22  ;;  %1017 = vmatpush.msra.mxu2 %v994_v20  ;;  %v992_v60 = vld [vmem:[#allocation5 + $0x40] sm:$0xff] }
 0x489   : > { %v775_v9 = vor.u32 %v774_v28, %v773_v26  ;;  %v778_v31 = vshll.u32 %v777_v30, 23 }
 0x48b   : > { %v779_v32 = vor.u32 4788187, %v778_v31  ;;  %v782_v35 = vcvt.s32.f32 %v775_v9 }
 0x48d   : > { %v780_v33 = vand.u32 2147483647, %v779_v32  ;;  %v1991_v32 = vld [vmem:[#allocation7 + $0x2] ss:$0 sm:$0xff] }
 0x48f   : > { %v783_v38 = vmul.f32 %v782_v35, %v780_v33 }
 0x491   : > { %v784_v40 = vxor.u32 2147483648, %v783_v38 }
 0x493   : > { %v785_v41 = vsel %vm664_vm13, %v784_v40, %v783_v38 }
 0x494   : > { %v788_v47 = vsel %vm663_vm14, %v2429_v46, %v785_v41  ;;  %v993_v46 = vld [vmem:[#allocation5 + $0x48] sm:$0xff] }
 0x495   : > { %v790_v49 = vmul.f32 %v788_v47, %v788_v47  ;;  %1018 = vmatpush.msra.mxu2 %v993_v46 }
 0x497   : > { %v791_v29 = vmul.f32 -0.001358992, %v790_v49  ;;  %v798_v52 = vmul.f32 -0.00019511016, %v790_v49  ;;  %1019 = vmatpush.msra.mxu2 %v992_v60 }
 0x499   : > { %v792_v56 = vadd.f32 0.041655596, %v791_v29  ;;  %v799_v57 = vadd.f32 0.008332121, %v798_v52 }
 0x49b   : > { %v793_v61 = vmul.f32 %v792_v56, %v790_v49  ;;  %v800_v62 = vmul.f32 %v799_v57, %v790_v49 }
 0x49d   : > { %v794_v63 = vadd.f32 -0.4999988, %v793_v61  ;;  %v801_v0 = vadd.f32 -0.16666654, %v800_v62 }
 0x49f   : > { %v795_v1 = vmul.f32 %v794_v63, %v790_v49  ;;  %v802_v2 = vmul.f32 %v801_v0, %v790_v49 }
 0x4a1   : > { %v796_v54 = vadd.f32 1.0, %v795_v1  ;;  %v803_v50 = vadd.f32 1.0, %v802_v2 }
 0x4a3   : > { %v804_v8 = vmul.f32 %v803_v50, %v788_v47  ;;  %v812_v25 = vxor.u32 2147483648, %v796_v54 }
 0x4a5   : > { %v809_v36 = vxor.u32 2147483648, %v804_v8  ;;  %v813_v59 = vsel %vm811_vm2, %v812_v25, %v804_v8  ;;  %v968_v4 = vsel %vm966_vm5, %v812_v25, %v804_v8 }
 0x4a7   : > { %v810_v10 = vsel %vm808_vm1, %v796_v54, %v809_v36  ;;  %v965_v24 = vsel %vm963_vm4, %v796_v54, %v809_v36 }
 0x4a8   : > { %v814_v11 = vsel %vm807_vm15, %v810_v10, %v813_v59  ;;  %v969_v13 = vsel %vm962_vm3, %v965_v24, %v968_v4 }
 0x4a9   : > { %v815_v12 = vsel %vm805_vm6, nan, %v814_v11  ;;  %v970_v6 = vsel %vm805_vm6, nan, %v969_v13 }
 0x4aa   : > { %v972_v14 = vmul.f32 %v970_v6, %v2426_v44  ;;  %v971_v7 = vmul.f32 %v815_v12, %v2414_v15 }
 0x4ac   : > { %v973_v58 = vmul.f32 %v972_v14, %v2421_v27 }
 0x4ae   : > { %v974_v16 = vadd.f32 %v973_v58, %v971_v7 }
 0x4b0   : > { %v975_v17 = vmul.f32 %v974_v16, %v974_v16 }
 0x4b2   : > { %v976_v18 = vsel %vm230_vm0, %v975_v17, 0.0 }
 0x4b3   : > { %977 = vadd.xlane.f32.xlu2 %v976_v18 }
 0x526   : > { %v978_v21 = vpop.xlane.xlu2 %977 }
 0x527   : > { %v979_v22 = vadd.f32 1e-12, %v978_v21 }
 0x529   : > { %2003 = vrsqrt.f32 %v979_v22  ;;  %vm986_vm8 = vweird.f32 %v979_v22 }
 0x52f   : > { %v2004_v44 = vpop.eup %2003 }
 0x530   : > { %v981_v27 = vmul.f32 %v2004_v44, %v979_v22  ;;  %vm987_vm7 = vweird.f32 %v2004_v44 }
 0x531   : > { %vm988_vm9 = vmor %vm986_vm8, %vm987_vm7 }
 0x532   : > { %v982_v26 = vmul.f32 %v2004_v44, %v981_v27 }
 0x534   : > { %v983_v15 = vmul.f32 0.5, %v982_v26 }
 0x536   : > { %v984_v28 = vsub.f32 1.5, %v983_v15 }
 0x538   : > { %v985_v30 = vmul.f32 %v2004_v44, %v984_v28 }
 0x53a   : > { %v989_v9 = vsel %vm988_vm9, %v2004_v44, %v985_v30 }
 0x53b   : > { %v2494_v31 = vmul.f32 %v989_v9, %v974_v16 }
 0x53d   : > { %1893 = vmatmul.msk.f32.vlgmr.msra.gmra.mxu2 %vm230_vm0, %v2494_v31 }
 0x5c0   : > { %v1021_v33 = vpop.f32.mrf.mxu2 }
 0x5c1   : > { %v1022_v35 = vadd.f32 %v1991_v32, %v1021_v33 }
 0x5c3   : > { %2005 = vtanh.f32 %v1022_v35 }
 0x5c9   : > { %v2006_v38 = vpop.eup %2005 }
 0x5ca   : > { %v1025_v40 = vmul.f32 %v2006_v38, %v2494_v31 }
 0x5cc   : > { %v1026_v41 = vsel %vm230_vm0, %v1025_v40, 0.0 }
 0x5cd   : > { %1027 = vadd.xlane.f32.xlu0 %v1026_v41 }
 0x640   : > { %v1028_v43 = vpop.xlane.xlu0 %1027 }
 0x641   : > { %v1029_v47 = vmul.f32 %v1028_v43, %v2494_v31 }
 0x643   : > { %v2501_v49 = vsub.f32 %v2006_v38, %v1029_v47 }
 0x645   : > { %v1031_v29 = vmul.f32 %v2501_v49, %v2501_v49 }
 0x647   : > { %v1032_v52 = vsel %vm230_vm0, %v1031_v29, 0.0 }
 0x648   : > { %1033 = vadd.xlane.f32.xlu1 %v1032_v52 }
 0x6bb   : > { %v1034_v55 = vpop.xlane.xlu1 %1033 }
 0x6bc   : > { %v1035_v56 = vadd.f32 1e-12, %v1034_v55 }
 0x6be   : > { %2007 = vrsqrt.f32 %v1035_v56  ;;  %vm1042_vm11 = vweird.f32 %v1035_v56 }
 0x6c4   : > { %v2008_v57 = vpop.eup %2007 }
 0x6c5   : > { %v1037_v34 = vmul.f32 %v2008_v57, %v1035_v56  ;;  %vm1043_vm10 = vweird.f32 %v2008_v57 }
 0x6c6   : > { %vm1044_vm12 = vmor %vm1042_vm11, %vm1043_vm10 }
 0x6c7   : > { %v1038_v61 = vmul.f32 %v2008_v57, %v1037_v34 }
 0x6c9   : > { %v1039_v62 = vmul.f32 0.5, %v1038_v61 }
 0x6cb   : > { %v1040_v63 = vsub.f32 1.5, %v1039_v62 }
 0x6cd   : > { %v1041_v0 = vmul.f32 %v2008_v57, %v1040_v63 }
 0x6cf   : > { %v2506_v53 = vsel %vm1044_vm12, %v2008_v57, %v1041_v0 }
 0x6d0   : > { %v2509_v1 = vmul.f32 %v2506_v53, %v1034_v55 }
 0x6d2   : > { %v1050_v2 = vand.u32 2139095040, %v2509_v1  ;;  %v1047_v3 = vand.u32 2147483647, %v2509_v1  ;;  %vm1049_vm10 = vcmp.lt.s32.totalorder %v2509_v1, 0 }
 0x6d4   : > { %v1051_v54 = vshrl.u32 %v1050_v2, 23  ;;  %v1054_v8 = vand.u32 8388607, %v1047_v3  ;;  %vm1048_vm11 = vcmp.le.f32.partialorder %v1047_v3, 0.7853982 }
 0x6d6   : > { %v1894_v50 = vadd.s32 4294967169, %v1051_v54  ;;  %v1055_v59 = vor.u32 8388608, %v1054_v8 }
 0x6d8   : > { %v1057_v5 = vadd.s32 1, %v1894_v50  ;;  %v2528_v21 = vshll.u32 %v1055_v59, 8 }
 0x6da   : > { %vm1058_vm13 = vcmp.gt.s32.totalorder %v1057_v5, 0  ;;  %v1096_v32 = vand.u32 65535, %v2528_v21  ;;  %v1097_v33 = vshrl.u32 %v2528_v21, 16 }
 0x6db   : > { %v1059_v25 = vsel %vm1058_vm13, %v1057_v5, 0 }
 0x6dc   : > { %v1061_v36 = vand.u32 31, %v1059_v25  ;;  %v2515_v24 = vshrl.u32 %v1059_v25, 5 }
 0x6de   : > { %v1062_v10 = vsub.s32 32, %v1061_v36  ;;  %v1064_v4 = vshll.u32 %v2185_v37, %v1061_v36  ;;  %v1067_v11 = vshll.u32 %v2186_v39, %v1061_v36  ;;  %v1070_v6 = vshll.u32 %v2187_v42, %v1061_v36 }
 0x6df   : > { %v1073_v58 = vshll.u32 %v2188_v45, %v1061_v36  ;;  %v1076_v16 = vshll.u32 %v2189_v48, %v1061_v36  ;;  %vm1079_vm14 = vcmp.lt.s32.totalorder %v2515_v24, 1  ;;  %vm1082_vm15 = vcmp.lt.s32.totalorder %v2515_v24, 4 }
 0x6e0   : > { %v1065_v13 = vshrl.u32 %v2186_v39, %v1062_v10  ;;  %v1068_v12 = vshrl.u32 %v2187_v42, %v1062_v10  ;;  %v1071_v14 = vshrl.u32 %v2188_v45, %v1062_v10  ;;  %v1074_v7 = vshrl.u32 %v2189_v48, %v1062_v10 }
 0x6e1   : > { %v1077_v17 = vshrl.u32 %v2190_v51, %v1062_v10  ;;  %vm1081_vm1 = vcmp.lt.s32.totalorder %v2515_v24, 3  ;;  %vm1080_vm2 = vcmp.lt.s32.totalorder %v2515_v24, 2 }
 0x6e2   : > { %v1066_v18 = vor.u32 %v1065_v13, %v1064_v4  ;;  %v1069_v19 = vor.u32 %v1068_v12, %v1067_v11  ;;  %v1072_v20 = vor.u32 %v1071_v14, %v1070_v6  ;;  %v1075_v46 = vor.u32 %v1074_v7, %v1073_v58 }
 0x6e3   : > { %v1078_v60 = vor.u32 %v1077_v17, %v1076_v16  ;;  %v1063_v4 = vshrl.u32 %v2185_v37, %v1062_v10 }
 0x6e4   : > { %v1087_v22 = vsel %vm1079_vm14, %v1066_v18, %v1069_v19  ;;  %v1091_v44 = vsel %vm1079_vm14, %v1069_v19, %v1072_v20  ;;  %v1088_v27 = vsel %vm1082_vm15, %v1075_v46, 920167782  ;;  %v1084_v25 = vsel %vm1082_vm15, %v1072_v20, 2102212464 }
 0x6e5   : > { %v1092_v26 = vsel %vm1082_vm15, %v1078_v60, 1326507024  ;;  %v1089_v15 = vsel %vm1081_vm1, %v1072_v20, %v1088_v27  ;;  %v1083_v58 = vsel %vm1079_vm14, %v1063_v4, %v1066_v18  ;;  %v1085_v7 = vsel %vm1081_vm1, %v1069_v19, %v1084_v25 }
 0x6e6   : > { %v1093_v28 = vsel %vm1081_vm1, %v1075_v46, %v1092_v26  ;;  %v1090_v30 = vsel %vm1080_vm2, %v1087_v22, %v1089_v15  ;;  %v1086_v10 = vsel %vm1080_vm2, %v1083_v58, %v1085_v7 }
 0x6e7   : > { %v1094_v9 = vsel %vm1080_vm2, %v1091_v44, %v1093_v28  ;;  %v1120_v40 = vand.u32 65535, %v1090_v30  ;;  %v1121_v41 = vshrl.u32 %v1090_v30, 16  ;;  %v1140_v26 = vmul.u32 %v2528_v21, %v1086_v10 }
 0x6e8   : > { %v1098_v35 = vand.u32 65535, %v1094_v9  ;;  %v1099_v38 = vshrl.u32 %v1094_v9, 16 }
 0x6e9   : > { %v1123_v29 = vmul.u32 %v1121_v41, %v1096_v32  ;;  %v1124_v52 = vmul.u32 %v1120_v40, %v1097_v33  ;;  %v1122_v34 = vmul.u32 %v1120_v40, %v1096_v32  ;;  %v1125_v0 = vmul.u32 %v1121_v41, %v1097_v33 }
 0x6ea   : > { %v1101_v43 = vmul.u32 %v1099_v38, %v1096_v32  ;;  %v1102_v47 = vmul.u32 %v1098_v35, %v1097_v33  ;;  %v1100_v55 = vmul.u32 %v1098_v35, %v1096_v32  ;;  %v1103_v57 = vmul.u32 %v1099_v38, %v1097_v33 }
 0x6eb   : > { %v1126_v61 = vshll.u32 %v1123_v29, 16  ;;  %v1128_v54 = vshll.u32 %v1124_v52, 16  ;;  %v1127_v6 = vshrl.u32 %v1123_v29, 16  ;;  %v1129_v20 = vshrl.u32 %v1124_v52, 16 }
 0x6ec   : > { %v1104_v56 = vshll.u32 %v1101_v43, 16  ;;  %v1106_v62 = vshll.u32 %v1102_v47, 16  ;;  %v1105_v11 = vshrl.u32 %v1101_v43, 16  ;;  %v1107_v16 = vshrl.u32 %v1102_v47, 16 }
 0x6ed   : > { %vm1130_vm4 = vc.u32 %v1122_v34, %v1126_v61  ;;  %v1132_v50 = vadd.s32 %v1126_v61, %v1122_v34 }
 0x6ee   : > { %vm1108_vm3 = vc.u32 %v1100_v55, %v1104_v56  ;;  %v1110_v63 = vadd.s32 %v1104_v56, %v1100_v55  ;;  %v1131_v8 = vsel %vm1130_vm4, 1, %v2191_v23 }
 0x6ef   : > { %v1109_v2 = vsel %vm1108_vm3, 1, %v2191_v23  ;;  %v1133_v59 = vadd.s32 %v1131_v8, %v1125_v0  ;;  %vm1134_vm6 = vc.u32 %v1132_v50, %v1128_v54  ;;  %v1136_v22 = vadd.s32 %v1132_v50, %v1128_v54 }
 0x6f0   : > { %v1111_v5 = vadd.s32 %v1109_v2, %v1103_v57  ;;  %vm1112_vm5 = vc.u32 %v1110_v63, %v1106_v62  ;;  %v1135_v12 = vsel %vm1134_vm6, 1, %v2191_v23  ;;  %vm1190_vm3 = vweird.f32 %v2509_v1 }
 0x6f1   : > { %v1113_v36 = vsel %vm1112_vm5, 1, %v2191_v23  ;;  %v1137_v14 = vadd.s32 %v1135_v12, %v1133_v59 }
 0x6f2   : > { %v1115_v13 = vadd.s32 %v1113_v36, %v1111_v5 }
 0x6f3   : > { %v1138_v46 = vadd.s32 %v1137_v14, %v1127_v6 }
 0x6f4   : > { %v1116_v17 = vadd.s32 %v1115_v13, %v1105_v11 }
 0x6f5   : > { %v1139_v44 = vadd.s32 %v1138_v46, %v1129_v20 }
 0x6f6   : > { %v1117_v60 = vadd.s32 %v1116_v17, %v1107_v16 }
 0x6f7   : > { %v1143_v27 = vadd.s32 1, %v1139_v44 }
 0x6f8   : > { %vm1142_vm7 = vc.u32 %v1117_v60, %v1136_v22  ;;  %v1141_v24 = vadd.s32 %v1136_v22, %v1117_v60 }
 0x6f9   : > { %v1144_v15 = vsel %vm1142_vm7, %v1143_v27, %v1139_v44 }
 0x6fa   : > { %v1145_v28 = vadd.s32 %v1144_v15, %v1140_v26 }
 0x6fc   : > { %v1146_v18 = vadd.s32 536870912, %v1145_v28 }
 0x6fe   : > { %v1147_v30 = vshrl.u32 %v1146_v18, 30 }
 0x700   : > { %v1148_v9 = vshll.u32 %v1147_v30, 30  ;;  %v1171_v0 = vsub.s32 4, %v1147_v30 }
 0x702   : > { %v1149_v19 = vsub.s32 %v1145_v28, %v1148_v9  ;;  %v1172_v8 = vsel %vm1049_vm10, %v1171_v0, %v1147_v30 }
 0x703   : > { %v1174_v59 = vsel %vm1048_vm11, 0, %v1172_v8 }
 0x704   : > { %vm1150_vm8 = vcmp.lt.s32.totalorder %v1149_v19, 0  ;;  %v1151_v32 = vsub.s32 0, %v1149_v19  ;;  %v1345_v6 = vadd.s32 3, %v1174_v59  ;;  %v1191_v16 = vand.u32 3, %v1174_v59 }
 0x706   : > { %v1152_v33 = vsel %vm1150_vm8, %v1151_v32, %v1149_v19  ;;  %v1346_v17 = vand.u32 3, %v1345_v6  ;;  %vm1192_vm12 = vcmp.lt.s32.totalorder %v1191_v16, 2  ;;  %vm1193_vm13 = vcmp.eq.s32.totalorder %v1191_v16, 0 }
 0x707   : > { %v1153_v35 = vclz %v1152_v33  ;;  %vm1196_vm14 = vcmp.eq.s32.totalorder %v1191_v16, 2 }
 0x708   : > { %vm1347_vm15 = vcmp.lt.s32.totalorder %v1346_v17, 2  ;;  %vm1348_vm1 = vcmp.eq.s32.totalorder %v1346_v17, 0  ;;  %vm1351_vm2 = vcmp.eq.s32.totalorder %v1346_v17, 2 }
 0x709   : > { %v1895_v38 = vadd.s32 4294967294, %v1153_v35 }
 0x70b   : > { %vm1896_vm9 = vcmp.lt.s32.totalorder %v1895_v38, 0 }
 0x70c   : > { %v1156_v40 = vsel %vm1896_vm9, 0, %v1895_v38  ;;  %v1380_v38 = vld [vmem:[#allocation5 + $0x78] sm:$0xff] }
 0x70d   : > { %v1157_v41 = vsub.s32 32, %v1156_v40  ;;  %v1161_v43 = vsub.s32 4294967266, %v1156_v40  ;;  %v1158_v47 = vshll.u32 %v1149_v19, %v1156_v40  ;;  %1401 = vmatpush.msra.mxu3 %v1380_v38  ;;  %v1379_v40 = vld [vmem:[#allocation5 + $0x70] sm:$0xff] }
 0x70f   : > { %v1159_v29 = vshrl.u32 %v1141_v24, %v1157_v41  ;;  %v1162_v52 = vadd.s32 127, %v1161_v43  ;;  %1402 = vmatpush.msra.mxu3 %v1379_v40  ;;  %v1377_v24 = vld [vmem:[#allocation5 + $0x60] sm:$0xff] }
 0x711   : > { %v1160_v21 = vor.u32 %v1159_v29, %v1158_v47  ;;  %v1163_v55 = vshll.u32 %v1162_v52, 23 }
 0x713   : > { %v1164_v56 = vor.u32 4788187, %v1163_v55  ;;  %v1167_v34 = vcvt.s32.f32 %v1160_v21 }
 0x715   : > { %v1165_v57 = vand.u32 2147483647, %v1164_v56  ;;  %v1992_v56 = vld [vmem:[#allocation7 + $0x3] ss:$0 sm:$0xff] }
 0x717   : > { %v1168_v61 = vmul.f32 %v1167_v34, %v1165_v57 }
 0x719   : > { %v1169_v62 = vxor.u32 2147483648, %v1168_v61 }
 0x71b   : > { %v1170_v63 = vsel %vm1049_vm10, %v1169_v62, %v1168_v61 }
 0x71c   : > { %v1173_v2 = vsel %vm1048_vm11, %v2509_v1, %v1170_v63  ;;  %v1378_v1 = vld [vmem:[#allocation5 + $0x68] sm:$0xff] }
 0x71d   : > { %v1175_v54 = vmul.f32 %v1173_v2, %v1173_v2  ;;  %1403 = vmatpush.msra.mxu3 %v1378_v1 }
 0x71f   : > { %v1176_v50 = vmul.f32 -0.001358992, %v1175_v54  ;;  %v1183_v5 = vmul.f32 -0.00019511016, %v1175_v54  ;;  %1404 = vmatpush.msra.mxu3 %v1377_v24 }
 0x721   : > { %v1177_v25 = vadd.f32 0.041655596, %v1176_v50  ;;  %v1184_v36 = vadd.f32 0.008332121, %v1183_v5 }
 0x723   : > { %v1178_v4 = vmul.f32 %v1177_v25, %v1175_v54  ;;  %v1185_v11 = vmul.f32 %v1184_v36, %v1175_v54 }
 0x725   : > { %v1179_v13 = vadd.f32 -0.4999988, %v1178_v4  ;;  %v1186_v12 = vadd.f32 -0.16666654, %v1185_v11 }
 0x727   : > { %v1180_v14 = vmul.f32 %v1179_v13, %v1175_v54  ;;  %v1187_v58 = vmul.f32 %v1186_v12, %v1175_v54 }
 0x729   : > { %v1181_v7 = vadd.f32 1.0, %v1180_v14  ;;  %v1188_v3 = vadd.f32 1.0, %v1187_v58 }
 0x72b   : > { %v1189_v20 = vmul.f32 %v1188_v3, %v1173_v2  ;;  %v1197_v46 = vxor.u32 2147483648, %v1181_v7 }
 0x72d   : > { %v1194_v60 = vxor.u32 2147483648, %v1189_v20  ;;  %v1198_v10 = vsel %vm1196_vm14, %v1197_v46, %v1189_v20  ;;  %v1353_v27 = vsel %vm1351_vm2, %v1197_v46, %v1189_v20 }
 0x72f   : > { %v1195_v22 = vsel %vm1193_vm13, %v1181_v7, %v1194_v60  ;;  %v1350_v44 = vsel %vm1348_vm1, %v1181_v7, %v1194_v60 }
 0x730   : > { %v1199_v26 = vsel %vm1192_vm12, %v1195_v22, %v1198_v10  ;;  %v1354_v15 = vsel %vm1347_vm15, %v1350_v44, %v1353_v27 }
 0x731   : > { %v1200_v28 = vsel %vm1190_vm3, nan, %v1199_v26  ;;  %v1355_v18 = vsel %vm1190_vm3, nan, %v1354_v15 }
 0x732   : > { %v1357_v30 = vmul.f32 %v1355_v18, %v2506_v53  ;;  %v1356_v19 = vmul.f32 %v1200_v28, %v2494_v31 }
 0x734   : > { %v1358_v9 = vmul.f32 %v1357_v30, %v2501_v49 }
 0x736   : > { %v1359_v32 = vadd.f32 %v1358_v9, %v1356_v19 }
 0x738   : > { %v1360_v33 = vmul.f32 %v1359_v32, %v1359_v32 }
 0x73a   : > { %v1361_v35 = vsel %vm230_vm0, %v1360_v33, 0.0 }
 0x73b   : > { %1362 = vadd.xlane.f32.xlu2 %v1361_v35 }
 0x7ae   : > { %v1363_v41 = vpop.xlane.xlu2 %1362 }
 0x7af   : > { %v1364_v43 = vadd.f32 1e-12, %v1363_v41 }
 0x7b1   : > { %2009 = vrsqrt.f32 %v1364_v43  ;;  %vm1371_vm5 = vweird.f32 %v1364_v43 }
 0x7b7   : > { %v2010_v53 = vpop.eup %2009 }
 0x7b8   : > { %v1366_v49 = vmul.f32 %v2010_v53, %v1364_v43  ;;  %vm1372_vm4 = vweird.f32 %v2010_v53 }
 0x7b9   : > { %vm1373_vm6 = vmor %vm1371_vm5, %vm1372_vm4 }
 0x7ba   : > { %v1367_v47 = vmul.f32 %v2010_v53, %v1366_v49 }
 0x7bc   : > { %v1368_v31 = vmul.f32 0.5, %v1367_v47 }
 0x7be   : > { %v1369_v29 = vsub.f32 1.5, %v1368_v31 }
 0x7c0   : > { %v1370_v52 = vmul.f32 %v2010_v53, %v1369_v29 }
 0x7c2   : > { %v1374_v21 = vsel %vm1373_vm6, %v2010_v53, %v1370_v52 }
 0x7c3   : > { %v2574_v55 = vmul.f32 %v1374_v21, %v1359_v32 }
 0x7c5   : > { %1900 = vmatmul.msk.f32.vlgmr.msra.gmra.mxu3 %vm230_vm0, %v2574_v55 }
 0x848   : > { %v1406_v57 = vpop.f32.mrf.mxu3 }
 0x849   : > { %v1407_v34 = vadd.f32 %v1992_v56, %v1406_v57 }
 0x84b   : > { %2011 = vtanh.f32 %v1407_v34 }
 0x851   : > { %v2012_v61 = vpop.eup %2011 }
 0x852   : > { %v1410_v62 = vmul.f32 %v2012_v61, %v2574_v55 }
 0x854   : > { %v1411_v63 = vsel %vm230_vm0, %v1410_v62, 0.0 }
 0x855   : > { %1412 = vadd.xlane.f32.xlu0 %v1411_v63 }
 0x8c8   : > { %v1413_v0 = vpop.xlane.xlu0 %1412 }
 0x8c9   : > { %v1414_v2 = vmul.f32 %v1413_v0, %v2574_v55 }
 0x8cb   : > { %v2581_v54 = vsub.f32 %v2012_v61, %v1414_v2 }
 0x8cd   : > { %v1416_v50 = vmul.f32 %v2581_v54, %v2581_v54 }
 0x8cf   : > { %v1417_v5 = vsel %vm230_vm0, %v1416_v50, 0.0 }
 0x8d0   : > { %1418 = vadd.xlane.f32.xlu1 %v1417_v5 }
 0x943   : > { %v1419_v8 = vpop.xlane.xlu1 %1418 }
 0x944   : > { %v1420_v25 = vadd.f32 1e-12, %v1419_v8 }
 0x946   : > { %2013 = vrsqrt.f32 %v1420_v25  ;;  %vm1427_vm8 = vweird.f32 %v1420_v25 }
 0x94c   : > { %v2014_v36 = vpop.eup %2013 }
 0x94d   : > { %v1422_v59 = vmul.f32 %v2014_v36, %v1420_v25  ;;  %vm1428_vm7 = vweird.f32 %v2014_v36 }
 0x94e   : > { %vm1429_vm9 = vmor %vm1427_vm8, %vm1428_vm7 }
 0x94f   : > { %v1423_v4 = vmul.f32 %v2014_v36, %v1422_v59 }
 0x951   : > { %v1424_v11 = vmul.f32 0.5, %v1423_v4 }
 0x953   : > { %v1425_v13 = vsub.f32 1.5, %v1424_v11 }
 0x955   : > { %v1426_v12 = vmul.f32 %v2014_v36, %v1425_v13 }
 0x957   : > { %v2586_v6 = vsel %vm1429_vm9, %v2014_v36, %v1426_v12 }
 0x958   : > { %v2589_v14 = vmul.f32 %v2586_v6, %v1419_v8 }
 0x95a   : > { %v1435_v58 = vand.u32 2139095040, %v2589_v14  ;;  %v1432_v16 = vand.u32 2147483647, %v2589_v14  ;;  %vm1434_vm7 = vcmp.lt.s32.totalorder %v2589_v14, 0 }
 0x95c   : > { %v1436_v7 = vshrl.u32 %v1435_v58, 23  ;;  %v1439_v20 = vand.u32 8388607, %v1432_v16  ;;  %vm1433_vm8 = vcmp.le.f32.partialorder %v1432_v16, 0.7853982 }
 0x95e   : > { %v1901_v3 = vadd.s32 4294967169, %v1436_v7  ;;  %v1440_v10 = vor.u32 8388608, %v1439_v20 }
 0x960   : > { %v1442_v17 = vadd.s32 1, %v1901_v3 }
 0x962   : > { %vm1443_vm10 = vcmp.gt.s32.totalorder %v1442_v17, 0 }
 0x963   : > { %v1444_v46 = vsel %vm1443_vm10, %v1442_v17, 0 }
 0x964   : > { %v1446_v60 = vand.u32 31, %v1444_v46  ;;  %v2595_v44 = vshrl.u32 %v1444_v46, 5 }
 0x966   : > { %v1447_v22 = vsub.s32 32, %v1446_v60  ;;  %v1449_v27 = vshll.u32 %v2185_v37, %v1446_v60  ;;  %v1452_v26 = vshll.u32 %v2186_v39, %v1446_v60  ;;  %v1455_v18 = vshll.u32 %v2187_v42, %v1446_v60 }
 0x967   : > { %v1458_v9 = vshll.u32 %v2188_v45, %v1446_v60  ;;  %v1461_v32 = vshll.u32 %v2189_v48, %v1446_v60  ;;  %vm1464_vm11 = vcmp.lt.s32.totalorder %v2595_v44, 1  ;;  %vm1467_vm12 = vcmp.lt.s32.totalorder %v2595_v44, 4 }
 0x968   : > { %v1450_v15 = vshrl.u32 %v2186_v39, %v1447_v22  ;;  %v1453_v28 = vshrl.u32 %v2187_v42, %v1447_v22  ;;  %v1456_v30 = vshrl.u32 %v2188_v45, %v1447_v22  ;;  %v1459_v19 = vshrl.u32 %v2189_v48, %v1447_v22 }
 0x969   : > { %v1462_v33 = vshrl.u32 %v2190_v51, %v1447_v22  ;;  %v2608_v39 = vshll.u32 %v1440_v10, 8  ;;  %vm1466_vm13 = vcmp.lt.s32.totalorder %v2595_v44, 3  ;;  %vm1465_vm14 = vcmp.lt.s32.totalorder %v2595_v44, 2 }
 0x96a   : > { %v1451_v35 = vor.u32 %v1450_v15, %v1449_v27  ;;  %v1454_v38 = vor.u32 %v1453_v28, %v1452_v26  ;;  %v1457_v40 = vor.u32 %v1456_v30, %v1455_v18  ;;  %v1460_v1 = vor.u32 %v1459_v19, %v1458_v9 }
 0x96b   : > { %v1463_v24 = vor.u32 %v1462_v33, %v1461_v32  ;;  %v1481_v47 = vand.u32 65535, %v2608_v39  ;;  %v1482_v31 = vshrl.u32 %v2608_v39, 16  ;;  %v1448_v17 = vshrl.u32 %v2185_v37, %v1447_v22 }
 0x96c   : > { %v1472_v42 = vsel %vm1464_vm11, %v1451_v35, %v1454_v38  ;;  %v1476_v45 = vsel %vm1464_vm11, %v1454_v38, %v1457_v40  ;;  %v1473_v48 = vsel %vm1467_vm12, %v1460_v1, 920167782  ;;  %v1469_v58 = vsel %vm1467_vm12, %v1457_v40, 2102212464 }
 0x96d   : > { %v1477_v51 = vsel %vm1467_vm12, %v1463_v24, 1326507024  ;;  %v1474_v41 = vsel %vm1466_vm13, %v1457_v40, %v1473_v48  ;;  %v1468_v26 = vsel %vm1464_vm11, %v1448_v17, %v1451_v35  ;;  %v1470_v15 = vsel %vm1466_vm13, %v1454_v38, %v1469_v58 }
 0x96e   : > { %v1478_v43 = vsel %vm1466_vm13, %v1460_v1, %v1477_v51  ;;  %v1475_v53 = vsel %vm1465_vm14, %v1472_v42, %v1474_v41  ;;  %v1471_v37 = vsel %vm1465_vm14, %v1468_v26, %v1470_v15 }
 0x96f   : > { %v1479_v49 = vsel %vm1465_vm14, %v1476_v45, %v1478_v43  ;;  %v1505_v21 = vand.u32 65535, %v1475_v53  ;;  %v1506_v56 = vshrl.u32 %v1475_v53, 16  ;;  %v1525_v33 = vmul.u32 %v2608_v39, %v1471_v37 }
 0x970   : > { %v1483_v29 = vand.u32 65535, %v1479_v49  ;;  %v1484_v52 = vshrl.u32 %v1479_v49, 16 }
 0x971   : > { %v1508_v61 = vmul.u32 %v1506_v56, %v1481_v47  ;;  %v1509_v62 = vmul.u32 %v1505_v21, %v1482_v31  ;;  %v1507_v50 = vmul.u32 %v1505_v21, %v1481_v47  ;;  %v1510_v36 = vmul.u32 %v1506_v56, %v1482_v31 }
 0x972   : > { %v1486_v57 = vmul.u32 %v1484_v52, %v1481_v47  ;;  %v1487_v34 = vmul.u32 %v1483_v29, %v1482_v31  ;;  %v1485_v63 = vmul.u32 %v1483_v29, %v1481_v47  ;;  %v1488_v2 = vmul.u32 %v1484_v52, %v1482_v31 }
 0x973   : > { %v1511_v5 = vshll.u32 %v1508_v61, 16  ;;  %v1513_v4 = vshll.u32 %v1509_v62, 16  ;;  %v1512_v10 = vshrl.u32 %v1508_v61, 16  ;;  %v1514_v30 = vshrl.u32 %v1509_v62, 16 }
 0x974   : > { %v1489_v0 = vshll.u32 %v1486_v57, 16  ;;  %v1491_v8 = vshll.u32 %v1487_v34, 16  ;;  %v1490_v20 = vshrl.u32 %v1486_v57, 16  ;;  %v1492_v28 = vshrl.u32 %v1487_v34, 16 }
 0x975   : > { %vm1515_vm1 = vc.u32 %v1507_v50, %v1511_v5  ;;  %v1517_v11 = vadd.s32 %v1511_v5, %v1507_v50 }
 0x976   : > { %vm1493_vm15 = vc.u32 %v1485_v63, %v1489_v0  ;;  %v1495_v25 = vadd.s32 %v1489_v0, %v1485_v63  ;;  %v1516_v12 = vsel %vm1515_vm1, 1, %v2191_v23 }
 0x977   : > { %v1494_v59 = vsel %vm1493_vm15, 1, %v2191_v23  ;;  %v1518_v3 = vadd.s32 %v1516_v12, %v1510_v36  ;;  %vm1519_vm3 = vc.u32 %v1517_v11, %v1513_v4  ;;  %v1521_v32 = vadd.s32 %v1517_v11, %v1513_v4 }
 0x978   : > { %v1496_v13 = vadd.s32 %v1494_v59, %v1488_v2  ;;  %vm1497_vm2 = vc.u32 %v1495_v25, %v1491_v8  ;;  %v1520_v60 = vsel %vm1519_vm3, 1, %v2191_v23  ;;  %vm1575_vm15 = vweird.f32 %v2589_v14 }
 0x979   : > { %v1498_v7 = vsel %vm1497_vm2, 1, %v2191_v23  ;;  %v1522_v27 = vadd.s32 %v1520_v60, %v1518_v3 }
 0x97a   : > { %v1500_v46 = vadd.s32 %v1498_v7, %v1496_v13 }
 0x97b   : > { %v1523_v9 = vadd.s32 %v1522_v27, %v1512_v10 }
 0x97c   : > { %v1501_v18 = vadd.s32 %v1500_v46, %v1490_v20 }
 0x97d   : > { %v1524_v22 = vadd.s32 %v1523_v9, %v1514_v30 }
 0x97e   : > { %v1502_v19 = vadd.s32 %v1501_v18, %v1492_v28 }
 0x97f   : > { %v1528_v23 = vadd.s32 1, %v1524_v22 }
 0x980   : > { %vm1527_vm4 = vc.u32 %v1502_v19, %v1521_v32  ;;  %v1526_v44 = vadd.s32 %v1521_v32, %v1502_v19 }
 0x981   : > { %v1529_v40 = vsel %vm1527_vm4, %v1528_v23, %v1524_v22 }
 0x982   : > { %v1530_v1 = vadd.s32 %v1529_v40, %v1525_v33 }
 0x984   : > { %v1531_v35 = vadd.s32 536870912, %v1530_v1 }
 0x986   : > { %v1532_v24 = vshrl.u32 %v1531_v35, 30 }
 0x988   : > { %v1533_v42 = vshll.u32 %v1532_v24, 30  ;;  %v1556_v63 = vsub.s32 4, %v1532_v24 }
 0x98a   : > { %v1534_v38 = vsub.s32 %v1530_v1, %v1533_v42  ;;  %v1557_v8 = vsel %vm1434_vm7, %v1556_v63, %v1532_v24 }
 0x98b   : > { %v1559_v59 = vsel %vm1433_vm8, 0, %v1557_v8 }
 0x98c   : > { %vm1535_vm5 = vcmp.lt.s32.totalorder %v1534_v38, 0  ;;  %v1536_v45 = vsub.s32 0, %v1534_v38  ;;  %v1730_v58 = vadd.s32 3, %v1559_v59  ;;  %v1576_v20 = vand.u32 3, %v1559_v59 }
 0x98e   : > { %v1537_v48 = vsel %vm1535_vm5, %v1536_v45, %v1534_v38  ;;  %v1731_v46 = vand.u32 3, %v1730_v58  ;;  %vm1577_vm9 = vcmp.lt.s32.totalorder %v1576_v20, 2  ;;  %vm1578_vm10 = vcmp.eq.s32.totalorder %v1576_v20, 0 }
 0x98f   : > { %v1538_v51 = vclz %v1537_v48  ;;  %vm1581_vm11 = vcmp.eq.s32.totalorder %v1576_v20, 2 }
 0x990   : > { %vm1732_vm12 = vcmp.lt.s32.totalorder %v1731_v46, 2  ;;  %vm1733_vm13 = vcmp.eq.s32.totalorder %v1731_v46, 0  ;;  %vm1736_vm14 = vcmp.eq.s32.totalorder %v1731_v46, 2 }
 0x991   : > { %v1902_v41 = vadd.s32 4294967294, %v1538_v51 }
 0x993   : > { %vm1903_vm6 = vcmp.lt.s32.totalorder %v1902_v41, 0 }
 0x994   : > { %v1541_v43 = vsel %vm1903_vm6, 0, %v1902_v41 }
 0x995   : > { %v1542_v53 = vsub.s32 32, %v1541_v43  ;;  %v1546_v49 = vsub.s32 4294967266, %v1541_v43  ;;  %v1543_v47 = vshll.u32 %v1534_v38, %v1541_v43 }
 0x997   : > { %v1544_v31 = vshrl.u32 %v1526_v44, %v1542_v53  ;;  %v1547_v29 = vadd.s32 127, %v1546_v49 }
 0x999   : > { %v1545_v39 = vor.u32 %v1544_v31, %v1543_v47  ;;  %v1548_v52 = vshll.u32 %v1547_v29, 23 }
 0x99b   : > { %v1549_v21 = vor.u32 4788187, %v1548_v52  ;;  %v1552_v57 = vcvt.s32.f32 %v1545_v39 }
 0x99d   : > { %v1550_v56 = vand.u32 2147483647, %v1549_v21 }
 0x99f   : > { %v1553_v34 = vmul.f32 %v1552_v57, %v1550_v56 }
 0x9a1   : > { %v1554_v61 = vxor.u32 2147483648, %v1553_v34 }
 0x9a3   : > { %v1555_v62 = vsel %vm1434_vm7, %v1554_v61, %v1553_v34 }
 0x9a4   : > { %v1558_v0 = vsel %vm1433_vm8, %v2589_v14, %v1555_v62 }
 0x9a5   : > { %v1560_v2 = vmul.f32 %v1558_v0, %v1558_v0 }
 0x9a7   : > { %v1561_v50 = vmul.f32 -0.001358992, %v1560_v2  ;;  %v1568_v5 = vmul.f32 -0.00019511016, %v1560_v2 }
 0x9a9   : > { %v1562_v25 = vadd.f32 0.041655596, %v1561_v50  ;;  %v1569_v36 = vadd.f32 0.008332121, %v1568_v5 }
 0x9ab   : > { %v1563_v4 = vmul.f32 %v1562_v25, %v1560_v2  ;;  %v1570_v11 = vmul.f32 %v1569_v36, %v1560_v2 }
 0x9ad   : > { %v1564_v13 = vadd.f32 -0.4999988, %v1563_v4  ;;  %v1571_v12 = vadd.f32 -0.16666654, %v1570_v11 }
 0x9af   : > { %v1565_v7 = vmul.f32 %v1564_v13, %v1560_v2  ;;  %v1572_v3 = vmul.f32 %v1571_v12, %v1560_v2 }
 0x9b1   : > { %v1566_v17 = vadd.f32 1.0, %v1565_v7  ;;  %v1573_v16 = vadd.f32 1.0, %v1572_v3 }
 0x9b3   : > { %v1574_v60 = vmul.f32 %v1573_v16, %v1558_v0  ;;  %v1582_v10 = vxor.u32 2147483648, %v1566_v17 }
 0x9b5   : > { %v1579_v27 = vxor.u32 2147483648, %v1574_v60  ;;  %v1583_v15 = vsel %vm1581_vm11, %v1582_v10, %v1574_v60  ;;  %v1738_v18 = vsel %vm1736_vm14, %v1582_v10, %v1574_v60 }
 0x9b7   : > { %v1580_v26 = vsel %vm1578_vm10, %v1566_v17, %v1579_v27  ;;  %v1735_v28 = vsel %vm1733_vm13, %v1566_v17, %v1579_v27 }
 0x9b8   : > { %v1584_v30 = vsel %vm1577_vm9, %v1580_v26, %v1583_v15  ;;  %v1739_v9 = vsel %vm1732_vm12, %v1735_v28, %v1738_v18 }
 0x9b9   : > { %v1585_v19 = vsel %vm1575_vm15, nan, %v1584_v30  ;;  %v1740_v32 = vsel %vm1575_vm15, nan, %v1739_v9 }
 0x9ba   : > { %v1742_v37 = vmul.f32 %v1740_v32, %v2586_v6  ;;  %v1741_v23 = vmul.f32 %v1585_v19, %v2574_v55 }
 0x9bc   : > { %v1743_v22 = vmul.f32 %v1742_v37, %v2581_v54 }
 0x9be   : > { %v1744_v33 = vadd.f32 %v1743_v22, %v1741_v23 }
 0x9c0   : > { %v1745_v40 = vmul.f32 %v1744_v33, %v1744_v33 }
 0x9c2   : > { %v1746_v1 = vsel %vm230_vm0, %v1745_v40, 0.0 }
 0x9c3   : > { %1747 = vadd.xlane.f32.xlu2 %v1746_v1 }
 0xa36   : > { %v1748_v35 = vpop.xlane.xlu2 %1747 }
 0xa37   : > { %v1749_v24 = vadd.f32 1e-12, %v1748_v35 }
 0xa39   : > { %2015 = vrsqrt.f32 %v1749_v24  ;;  %vm1756_vm2 = vweird.f32 %v1749_v24 }
 0xa3f   : > { %v2016_v14 = vpop.eup %2015 }
 0xa40   : > { %v1751_v42 = vmul.f32 %v2016_v14, %v1749_v24  ;;  %vm1757_vm1 = vweird.f32 %v2016_v14 }
 0xa41   : > { %vm1758_vm3 = vmor %vm1756_vm2, %vm1757_vm1 }
 0xa42   : > { %v1752_v38 = vmul.f32 %v2016_v14, %v1751_v42 }
 0xa44   : > { %v1753_v45 = vmul.f32 0.5, %v1752_v38 }
 0xa46   : > { %v1754_v55 = vsub.f32 1.5, %v1753_v45 }
 0xa48   : > { %v1755_v54 = vmul.f32 %v2016_v14, %v1754_v55 }
 0xa4a   : > { %v1759_v6 = vsel %vm1758_vm3, %v2016_v14, %v1755_v54 }
 0xa4b   : > { %v1760_v48 = vmul.f32 %v1759_v6, %v1744_v33 }
 0xa4d   : > { %1761 = vst.msk [vmem:[%s220_s28] sm:$0xff] %vm230_vm0, %v1760_v48 }
 0xa4e   : > { %2134 = shalt.err (!%p2131_p9)
}
 0xa4f   : > { %1921 = dma.vmem_to_hbm [thread:$0]  (%p2281_p4), %s1776_s29, 128, %s1778_s30, %s1763_s19  }
 0xa50 PF: > { %s1789_s16 = sand.u32 1, %s2165_s12   ;;  %p2700_p10 = scmp.ge.s32.totalorder %s2177_s15, 2 }
 0xa51   : > { %s1790_s23 = scalar_lea.sflag [#allocation4], %s1789_s16 }
 0xa52   : > { %p1935_p13 = pnand %p2700_p10, %p2285_p6 }
 0xa54   : > { %p1936_p11 = pneg %p1935_p13 }
 0xa56   : > { %2160 = dma.done.wait (%p1936_p11), %s1790_s23, 128  }
 0xa57   : > { %2162 = vsyncadd (%p1936_p11), %s1790_s23, 4294967168  ;;  %p17_p0 = scmp.ge.s32.totalorder %s2255_s6, 4   ;;  %s2701_s12 = smov %s2169_s13 }
 0xa58   : > { %s2702_s13 = smov %s2173_s14  ;;  %s2703_s14 = smov %s2266_s9 }
 0xa59   : > { %s2704_s15 = smov %s2255_s6  ;;  %19 = sbr.rel (!%p17_p0) target bundleno = 6 (0x6), region = 91 }
 0xa5e   :  { %1796 = vsyncpa [#allocation3], 1 }
 0xa5f   :  { %1798 = vsyncpa [#allocation3 + $0x1], 1 }
 0xa60   :  { %1799 = vsyncpa [#allocation6], 1 }
 0xa61   :  { %1800 = vsyncpa [#allocation4], 1 }
 0xa62   :  { %1802 = vsyncpa [#allocation4 + $0x1], 1 }

</bundles_post_ra>
